<compile_context>
chip_gen: v7x
topology: tpu7x:2x2x1
jax: 0.10.0
libtpu: 0.0.40
codegen_flags: <defaults>
</compile_context>

<pallas_src>
import functools
import math

import jax
import jax.numpy as jnp
from jax.experimental import pallas as pl
from jax.experimental.pallas import tpu as pltpu

# ----------------------------- configuration -----------------------------
BATCH = 2
IMG_HW = 32           # input image spatial size
PATCH = 8             # ViT patch size -> 4x4 = 16 tokens
BACKBONE_C = 48       # backbone_out_channels (image encoder output channels)
HIDDEN = 32           # transformer.d_model ; GroupNorm(32, 32) -> per-channel norm
NUM_QUERIES = 8
NUM_DEC_LAYERS = 2
TEXT_LEN = 8          # synthetic caption token length
BERT_HIDDEN = 32      # synthetic BERT hidden size
VOCAB = 64
MAX_TEXT_LEN = 256    # IT_decoder.max_text_len (pred_logits padded to this)
GN_EPS = 1e-5
INV_SIG_EPS = 1e-3

_VMEM = pltpu.MemorySpace.VMEM


# ----------------------------- in-kernel helpers -----------------------------
def _mm(x3, w, b=None, relu=False):
    """(B, M, K) @ (K, N) [+ b] [relu] -> (B, M, N).  Trace-time helper."""
    B, M, K = x3.shape
    N = w.shape[-1]
    y = jnp.dot(x3.reshape(B * M, K), w, preferred_element_type=jnp.float32)
    if b is not None:
        y = y + b
    if relu:
        y = jnp.maximum(y, 0.0)
    return y.reshape(B, M, N)


def _softmax_attn(q, mem, scale):
    """q: (B, nq, D), mem: (B, S, D) -> (B, nq, D); scale folded into q."""
    s = jnp.einsum("bqd,bkd->bqk", q * scale, mem,
                   preferred_element_type=jnp.float32)
    s = s - jnp.max(s, axis=-1, keepdims=True)
    p = jnp.exp(s)
    p = p * pl.reciprocal(jnp.sum(p, axis=-1, keepdims=True), approx=True)
    return jnp.einsum("bqk,bkd->bqd", p, mem,
                      preferred_element_type=jnp.float32)


# ----------------------------- Pallas kernels -----------------------------
def _encoder_kernel(patches_ref, pw_ref, pb_ref, projw_ref, projb_ref,
                    g_ref, beta_ref, src_ref, *, attn_scale, eps):
    """Fused: patch-embed matmul -> self-attn residual -> 1x1 conv -> GroupNorm."""
    patches = patches_ref[...]                                   # (B, S, P*P*3)
    tokens = _mm(patches, pw_ref[...], pb_ref[...])              # (B, S, Cb)
    # one self-attention block over patch tokens (residual); rest of ViT stubbed
    tokens = tokens + _softmax_attn(tokens, tokens, attn_scale)
    # input_proj: 1x1 conv == per-pixel matmul over channels
    y = _mm(tokens, projw_ref[...], projb_ref[...])              # (B, S, H)
    # GroupNorm(32, hidden=32): num_groups == num_channels -> per-channel
    # statistics over the spatial dimension, per sample.
    mean = jnp.mean(y, axis=1, keepdims=True)
    var = jnp.mean((y - mean) ** 2, axis=1, keepdims=True)
    yn = (y - mean) * jax.lax.rsqrt(var + eps)
    src_ref[...] = (yn * g_ref[...] + beta_ref[...]).astype(src_ref.dtype)


def _decoder_kernel(src_ref, text_ref, mask_ref, query_ref, refinit_ref,
                    featw_ref, featb_ref, decw_ref, decb_ref,
                    w1_ref, b1_ref, w2_ref, b2_ref, w3_ref, b3_ref,
                    logits_ref, boxes_ref, *, num_layers, attn_scale, inv_eps):
    """Fused: feat_map linear + decoder layers + bbox MLP refinement + ContrastiveEmbed."""
    B, S, D = src_ref.shape
    nq = query_ref.shape[0]

    src = src_ref[...]                                           # (B, S, H)

    # feat_map: Linear(bert_hidden, hidden) over text padded to MAX_TEXT_LEN
    enc_text = _mm(text_ref[...], featw_ref[...], featb_ref[...])  # (B, 256, H)

    # transformer stub: learned queries, sigmoid'ed initial reference points
    tgt = jnp.broadcast_to(query_ref[...][None], (B, nq, D))
    ref = jax.nn.sigmoid(jnp.broadcast_to(refinit_ref[...][None], (B, nq, 4)))

    w1, b1 = w1_ref[...], b1_ref[...]
    w2, b2 = w2_ref[...], b2_ref[...]
    w3, b3 = w3_ref[...], b3_ref[...]

    for l in range(num_layers):                                  # static unroll
        # cross-attention of queries over image memory + per-layer linear
        attn = _softmax_attn(tgt, src, attn_scale)
        tgt = _mm(attn, decw_ref[l], decb_ref[l], relu=True)
        # shared bbox MLP(hidden, hidden, 4, 3); iterative box refinement:
        #   out = sigmoid(delta + inverse_sigmoid(ref))
        x = _mm(tgt, w1, b1, relu=True)
        x = _mm(x, w2, b2, relu=True)
        delta = _mm(x, w3, b3)
        r = jnp.clip(ref, 0.0, 1.0)
        inv_sig = (jnp.log(jnp.maximum(r, inv_eps))
                   - jnp.log(jnp.maximum(1.0 - r, inv_eps)))
        ref = jax.nn.sigmoid(delta + inv_sig)

    boxes_ref[...] = ref.astype(boxes_ref.dtype)                 # pred_boxes (last layer)

    # ContrastiveEmbed on last-layer hidden states; lane-dense 256-wide output.
    # mask covers both the real text_token_mask and the pad-to-max_text_len -inf fill.
    logits = jnp.einsum("bqd,bld->bql", tgt, enc_text,
                        preferred_element_type=jnp.float32)      # (B, nq, 256)
    logits = jnp.where(mask_ref[...] > 0.5, logits, jnp.float32(-jnp.inf))
    logits_ref[...] = logits.astype(logits_ref.dtype)


# ----------------------------- pallas_call wrappers -----------------------------
def encoder_forward(patches, p):
    """patches: (B, S, PATCH*PATCH*3) -> src (B, S, HIDDEN)."""
    B, S, _ = patches.shape
    kernel = functools.partial(_encoder_kernel,
                               attn_scale=1.0 / math.sqrt(BACKBONE_C),
                               eps=GN_EPS)
    return pl.pallas_call(
        kernel,
        out_shape=jax.ShapeDtypeStruct((B, S, HIDDEN), jnp.float32),
        in_specs=[pl.BlockSpec(memory_space=_VMEM)] * 7,
        out_specs=pl.BlockSpec(memory_space=_VMEM),
    )(patches,
      p["patch_w"], p["patch_b"].reshape(1, -1),
      p["proj_w"], p["proj_b"].reshape(1, -1),
      p["gn_gamma"].reshape(1, -1), p["gn_beta"].reshape(1, -1))


def decoder_forward(src, text_hidden, text_mask, p):
    """src: (B, S, HIDDEN), text_hidden: (B, 256, BERT_HIDDEN), text_mask: (B, 1, 256)."""
    B, _, D = src.shape
    dec_w = jnp.stack([p[f"dec_w_{l}"] for l in range(NUM_DEC_LAYERS)])
    dec_b = jnp.stack([p[f"dec_b_{l}"].reshape(1, -1)
                       for l in range(NUM_DEC_LAYERS)])
    kernel = functools.partial(_decoder_kernel,
                               num_layers=NUM_DEC_LAYERS,
                               attn_scale=1.0 / math.sqrt(D),
                               inv_eps=INV_SIG_EPS)
    return pl.pallas_call(
        kernel,
        out_shape=(jax.ShapeDtypeStruct((B, NUM_QUERIES, MAX_TEXT_LEN), jnp.float32),
                   jax.ShapeDtypeStruct((B, NUM_QUERIES, 4), jnp.float32)),
        in_specs=[pl.BlockSpec(memory_space=_VMEM)] * 15,
        out_specs=(pl.BlockSpec(memory_space=_VMEM),
                   pl.BlockSpec(memory_space=_VMEM)),
    )(src, text_hidden, text_mask,
      p["query_embed"], p["ref_point_init"],
      p["feat_w"], p["feat_b"].reshape(1, -1),
      dec_w, dec_b,
      p["bbox_w1"], p["bbox_b1"].reshape(1, -1),
      p["bbox_w2"], p["bbox_b2"].reshape(1, -1),
      p["bbox_w3"], p["bbox_b3"].reshape(1, -1))


# ----------------------------- model (glue + kernels) -----------------------------
def init_params(key):
    ks = jax.random.split(key, 16)

    def xavier(k, shape):
        fan_in, fan_out = shape[0], shape[1]
        lim = math.sqrt(6.0 / (fan_in + fan_out))
        return jax.random.uniform(k, shape, jnp.float32, -lim, lim)

    p = {}
    # ImageEncoderViT (stub): patch-embed conv (k=stride=PATCH) as a matmul.
    p["patch_w"] = xavier(ks[0], (PATCH * PATCH * 3, BACKBONE_C))
    p["patch_b"] = jnp.zeros((BACKBONE_C,), jnp.float32)
    # IT_decoder.input_proj: Conv2d(backbone_out_channels, hidden, 1) + GroupNorm(32, hidden)
    p["proj_w"] = xavier(ks[1], (BACKBONE_C, HIDDEN))
    p["proj_b"] = jnp.zeros((HIDDEN,), jnp.float32)
    p["gn_gamma"] = jnp.ones((HIDDEN,), jnp.float32)
    p["gn_beta"] = jnp.zeros((HIDDEN,), jnp.float32)
    # BERT stub embedding table + feat_map Linear(bert_hidden, hidden) (xavier W, zero b)
    p["bert_embed"] = 0.05 * jax.random.normal(ks[2], (VOCAB, BERT_HIDDEN), jnp.float32)
    p["feat_w"] = xavier(ks[3], (BERT_HIDDEN, HIDDEN))
    p["feat_b"] = jnp.zeros((HIDDEN,), jnp.float32)
    # transformer stub: learned queries, initial reference points, per-layer linear
    p["query_embed"] = 0.05 * jax.random.normal(ks[4], (NUM_QUERIES, HIDDEN), jnp.float32)
    p["ref_point_init"] = jax.random.normal(ks[5], (NUM_QUERIES, 4), jnp.float32)
    for l in range(NUM_DEC_LAYERS):
        p[f"dec_w_{l}"] = xavier(ks[6 + l], (HIDDEN, HIDDEN))
        p[f"dec_b_{l}"] = jnp.zeros((HIDDEN,), jnp.float32)
    # shared bbox_embed MLP(hidden, hidden, 4, 3); last layer zero-initialized
    p["bbox_w1"] = xavier(ks[10], (HIDDEN, HIDDEN))
    p["bbox_b1"] = jnp.zeros((HIDDEN,), jnp.float32)
    p["bbox_w2"] = xavier(ks[11], (HIDDEN, HIDDEN))
    p["bbox_b2"] = jnp.zeros((HIDDEN,), jnp.float32)
    p["bbox_w3"] = jnp.zeros((HIDDEN, 4), jnp.float32)   # nn.init.constant_(..., 0)
    p["bbox_b3"] = jnp.zeros((4,), jnp.float32)          # nn.init.constant_(..., 0)
    return p


@jax.jit
def sam_forward(imgs, token_ids, p):
    # ---- image_encoder: NHWC image -> non-overlapping patches (B, S, P*P*3) ----
    B, H, W, C = imgs.shape
    hp, wp = H // PATCH, W // PATCH
    patches = imgs.reshape(B, hp, PATCH, wp, PATCH, C)
    patches = patches.transpose(0, 1, 3, 2, 4, 5).reshape(B, hp * wp, PATCH * PATCH * C)

    # Fused pallas_call #1: patch-embed + self-attn residual + input_proj + GroupNorm
    src = encoder_forward(patches, p)                              # (B, S, HIDDEN)

    # ---- IT_decoder text branch (BERT stub = embedding lookup; gather stays in XLA) ----
    L = token_ids.shape[1]
    text_hidden = p["bert_embed"][token_ids]                       # (B, L, BERT_HIDDEN)
    # pad text to max_text_len so the contrastive logits are written lane-dense in-kernel
    text_hidden = jnp.pad(text_hidden, ((0, 0), (0, MAX_TEXT_LEN - L), (0, 0)))
    text_mask = jnp.zeros((B, 1, MAX_TEXT_LEN), jnp.float32).at[..., :L].set(1.0)

    # Fused pallas_call #2: feat_map + decoder layers + bbox refinement + contrastive head
    pred_logits, pred_boxes = decoder_forward(src, text_hidden, text_mask, p)

    return {"pred_logits": pred_logits, "pred_boxes": pred_boxes}


# ----------------------------- main -----------------------------
if __name__ == "__main__":
    key = jax.random.PRNGKey(0)
    k_img, k_tok, k_par = jax.random.split(key, 3)

    imgs = jax.random.normal(k_img, (BATCH, IMG_HW, IMG_HW, 3), jnp.float32)   # NHWC
    token_ids = jax.random.randint(k_tok, (BATCH, TEXT_LEN), 0, VOCAB)
    params = init_params(k_par)

    out = sam_forward(imgs, token_ids, params)
    jax.block_until_ready(out)

    assert out["pred_logits"].shape == (BATCH, NUM_QUERIES, MAX_TEXT_LEN)
    assert out["pred_boxes"].shape == (BATCH, NUM_QUERIES, 4)
    assert bool(jnp.all((out["pred_boxes"] >= 0.0) & (out["pred_boxes"] <= 1.0)))
    assert bool(jnp.all(jnp.isfinite(out["pred_logits"][..., :TEXT_LEN])))
    assert bool(jnp.all(jnp.isneginf(out["pred_logits"][..., TEXT_LEN:])))
    print("KERNEL_OK")
</pallas_src>

<mosaic_0001>
module attributes {stable_mosaic.version = 11 : i64} {
  func.func @_encoder_kernel(%arg0: memref<2x16x192xf32, #tpu.memory_space<vmem>>, %arg1: memref<192x48xf32, #tpu.memory_space<vmem>>, %arg2: memref<1x48xf32, #tpu.memory_space<vmem>>, %arg3: memref<48x32xf32, #tpu.memory_space<vmem>>, %arg4: memref<1x32xf32, #tpu.memory_space<vmem>>, %arg5: memref<1x32xf32, #tpu.memory_space<vmem>>, %arg6: memref<1x32xf32, #tpu.memory_space<vmem>>, %arg7: memref<2x16x32xf32, #tpu.memory_space<vmem>>) attributes {dimension_semantics = [], scalar_prefetch = 0 : i64, scratch_operands = 0 : i64, tpu.core_type = #tpu.core_type<tc>} {
    %c0 = arith.constant 0 : index
    %c0_0 = arith.constant 0 : index
    %c0_1 = arith.constant 0 : index
    %0 = vector.load %arg0[%c0, %c0_0, %c0_1] : memref<2x16x192xf32, #tpu.memory_space<vmem>>, vector<2x16x192xf32>
    %c0_2 = arith.constant 0 : index
    %c0_3 = arith.constant 0 : index
    %1 = vector.load %arg1[%c0_2, %c0_3] : memref<192x48xf32, #tpu.memory_space<vmem>>, vector<192x48xf32>
    %c0_4 = arith.constant 0 : index
    %c0_5 = arith.constant 0 : index
    %2 = vector.load %arg2[%c0_4, %c0_5] : memref<1x48xf32, #tpu.memory_space<vmem>>, vector<1x48xf32>
    %3 = vector.shape_cast %0 : vector<2x16x192xf32> to vector<32x192xf32>
    %cst = arith.constant dense<0.000000e+00> : vector<32x48xf32>
    %4 = tpu.matmul %3, %1, %cst {dimension_numbers = #tpu.dot_dimension_numbers<[1], [0], [0], [1], [0, 0, 1, 1], [], []>} : vector<32x192xf32>, vector<192x48xf32>, vector<32x48xf32> -> vector<32x48xf32>
    %5 = vector.broadcast %2 : vector<1x48xf32> to vector<32x48xf32>
    %6 = arith.addf %4, %5 : vector<32x48xf32>
    %7 = vector.shape_cast %6 : vector<32x48xf32> to vector<2x16x48xf32>
    %cst_6 = arith.constant 0.144337565 : f32
    %8 = vector.broadcast %cst_6 : f32 to vector<2x16x48xf32>
    %9 = arith.mulf %7, %8 : vector<2x16x48xf32>
    "tpu.trace_start"() <{level = 10 : i32, message = "bqd,bkd->bqk"}> : () -> ()
    %cst_7 = arith.constant dense<0.000000e+00> : vector<2x16x16xf32>
    %10 = tpu.matmul %9, %7, %cst_7 {dimension_numbers = #tpu.dot_dimension_numbers<[2], [2], [1], [1], [0, 0, 0, 1, 1, 1], [0], [0]>} : vector<2x16x48xf32>, vector<2x16x48xf32>, vector<2x16x16xf32> -> vector<2x16x16xf32>
    "tpu.trace_stop"() : () -> ()
    %cst_8 = arith.constant dense<0xFF800000> : vector<2x16xf32>
    %11 = vector.multi_reduction <maximumf>, %10, %cst_8 [2] : vector<2x16x16xf32> to vector<2x16xf32>
    %12 = vector.shape_cast %11 : vector<2x16xf32> to vector<2x16x1xf32>
    %13 = vector.broadcast %12 : vector<2x16x1xf32> to vector<2x16x16xf32>
    %14 = arith.subf %10, %13 : vector<2x16x16xf32>
    %15 = math.exp %14 : vector<2x16x16xf32>
    %cst_9 = arith.constant dense<0.000000e+00> : vector<2x16xf32>
    %16 = vector.multi_reduction <add>, %15, %cst_9 [2] : vector<2x16x16xf32> to vector<2x16xf32>
    %17 = vector.shape_cast %16 : vector<2x16xf32> to vector<2x16x1xf32>
    %18 = tpu.reciprocal %17 {approx = true} : vector<2x16x1xf32> -> vector<2x16x1xf32>
    %19 = vector.broadcast %18 : vector<2x16x1xf32> to vector<2x16x16xf32>
    %20 = arith.mulf %15, %19 : vector<2x16x16xf32>
    "tpu.trace_start"() <{level = 10 : i32, message = "bqk,bkd->bqd"}> : () -> ()
    %cst_10 = arith.constant dense<0.000000e+00> : vector<2x16x48xf32>
    %21 = tpu.matmul %20, %7, %cst_10 {dimension_numbers = #tpu.dot_dimension_numbers<[2], [1], [1], [2], [0, 0, 0, 1, 1, 2], [0], [0]>} : vector<2x16x16xf32>, vector<2x16x48xf32>, vector<2x16x48xf32> -> vector<2x16x48xf32>
    "tpu.trace_stop"() : () -> ()
    %22 = arith.addf %7, %21 : vector<2x16x48xf32>
    %c0_11 = arith.constant 0 : index
    %c0_12 = arith.constant 0 : index
    %23 = vector.load %arg3[%c0_11, %c0_12] : memref<48x32xf32, #tpu.memory_space<vmem>>, vector<48x32xf32>
    %c0_13 = arith.constant 0 : index
    %c0_14 = arith.constant 0 : index
    %24 = vector.load %arg4[%c0_13, %c0_14] : memref<1x32xf32, #tpu.memory_space<vmem>>, vector<1x32xf32>
    %25 = vector.shape_cast %22 : vector<2x16x48xf32> to vector<32x48xf32>
    %cst_15 = arith.constant dense<0.000000e+00> : vector<32x32xf32>
    %26 = tpu.matmul %25, %23, %cst_15 {dimension_numbers = #tpu.dot_dimension_numbers<[1], [0], [0], [1], [0, 0, 1, 1], [], []>} : vector<32x48xf32>, vector<48x32xf32>, vector<32x32xf32> -> vector<32x32xf32>
    %27 = vector.broadcast %24 : vector<1x32xf32> to vector<32x32xf32>
    %28 = arith.addf %26, %27 : vector<32x32xf32>
    %29 = vector.shape_cast %28 : vector<32x32xf32> to vector<2x16x32xf32>
    %cst_16 = arith.constant dense<0.000000e+00> : vector<2x32xf32>
    %30 = vector.multi_reduction <add>, %29, %cst_16 [1] : vector<2x16x32xf32> to vector<2x32xf32>
    %31 = vector.shape_cast %30 : vector<2x32xf32> to vector<2x1x32xf32>
    %cst_17 = arith.constant 1.600000e+01 : f32
    %32 = vector.broadcast %cst_17 : f32 to vector<2x1x32xf32>
    %33 = arith.divf %31, %32 : vector<2x1x32xf32>
    %34 = vector.broadcast %33 : vector<2x1x32xf32> to vector<2x16x32xf32>
    %35 = arith.subf %29, %34 : vector<2x16x32xf32>
    %36 = arith.mulf %35, %35 : vector<2x16x32xf32>
    %cst_18 = arith.constant dense<0.000000e+00> : vector<2x32xf32>
    %37 = vector.multi_reduction <add>, %36, %cst_18 [1] : vector<2x16x32xf32> to vector<2x32xf32>
    %38 = vector.shape_cast %37 : vector<2x32xf32> to vector<2x1x32xf32>
    %cst_19 = arith.constant 1.600000e+01 : f32
    %39 = vector.broadcast %cst_19 : f32 to vector<2x1x32xf32>
    %40 = arith.divf %38, %39 : vector<2x1x32xf32>
    %41 = vector.broadcast %33 : vector<2x1x32xf32> to vector<2x16x32xf32>
    %42 = arith.subf %29, %41 : vector<2x16x32xf32>
    %cst_20 = arith.constant 9.99999974E-6 : f32
    %43 = vector.broadcast %cst_20 : f32 to vector<2x1x32xf32>
    %44 = arith.addf %40, %43 : vector<2x1x32xf32>
    %45 = math.rsqrt %44 : vector<2x1x32xf32>
    %46 = vector.broadcast %45 : vector<2x1x32xf32> to vector<2x16x32xf32>
    %47 = arith.mulf %42, %46 : vector<2x16x32xf32>
    %c0_21 = arith.constant 0 : index
    %c0_22 = arith.constant 0 : index
    %48 = vector.load %arg5[%c0_21, %c0_22] : memref<1x32xf32, #tpu.memory_space<vmem>>, vector<1x32xf32>
    %49 = vector.shape_cast %48 : vector<1x32xf32> to vector<1x1x32xf32>
    %50 = vector.broadcast %49 : vector<1x1x32xf32> to vector<2x16x32xf32>
    %51 = arith.mulf %47, %50 : vector<2x16x32xf32>
    %c0_23 = arith.constant 0 : index
    %c0_24 = arith.constant 0 : index
    %52 = vector.load %arg6[%c0_23, %c0_24] : memref<1x32xf32, #tpu.memory_space<vmem>>, vector<1x32xf32>
    %53 = vector.shape_cast %52 : vector<1x32xf32> to vector<1x1x32xf32>
    %54 = vector.broadcast %53 : vector<1x1x32xf32> to vector<2x16x32xf32>
    %55 = arith.addf %51, %54 : vector<2x16x32xf32>
    %c0_25 = arith.constant 0 : index
    %c0_26 = arith.constant 0 : index
    %c0_27 = arith.constant 0 : index
    %56 = vector.load %arg7[%c0_25, %c0_26, %c0_27] : memref<2x16x32xf32, #tpu.memory_space<vmem>>, vector<2x16x32xf32>
    tpu.vector_store %arg7[%c0_25, %c0_26, %c0_27], %55 {strides = array<i32>} : memref<2x16x32xf32, #tpu.memory_space<vmem>>, vector<2x16x32xf32>,
    return
  }
}

module attributes {stable_mosaic.version = 11 : i64} {
  func.func @_decoder_kernel(%arg0: memref<2x16x32xf32, #tpu.memory_space<vmem>>, %arg1: memref<2x256x32xf32, #tpu.memory_space<vmem>>, %arg2: memref<2x1x256xf32, #tpu.memory_space<vmem>>, %arg3: memref<8x32xf32, #tpu.memory_space<vmem>>, %arg4: memref<8x4xf32, #tpu.memory_space<vmem>>, %arg5: memref<32x32xf32, #tpu.memory_space<vmem>>, %arg6: memref<1x32xf32, #tpu.memory_space<vmem>>, %arg7: memref<2x32x32xf32, #tpu.memory_space<vmem>>, %arg8: memref<2x1x32xf32, #tpu.memory_space<vmem>>, %arg9: memref<32x32xf32, #tpu.memory_space<vmem>>, %arg10: memref<1x32xf32, #tpu.memory_space<vmem>>, %arg11: memref<32x32xf32, #tpu.memory_space<vmem>>, %arg12: memref<1x32xf32, #tpu.memory_space<vmem>>, %arg13: memref<32x4xf32, #tpu.memory_space<vmem>>, %arg14: memref<1x4xf32, #tpu.memory_space<vmem>>, %arg15: memref<2x8x256xf32, #tpu.memory_space<vmem>>, %arg16: memref<2x8x4xf32, #tpu.memory_space<vmem>>) attributes {dimension_semantics = [], scalar_prefetch = 0 : i64, scratch_operands = 0 : i64, tpu.core_type = #tpu.core_type<tc>} {
    %c0 = arith.constant 0 : index
    %c0_0 = arith.constant 0 : index
    %c0_1 = arith.constant 0 : index
    %0 = vector.load %arg0[%c0, %c0_0, %c0_1] : memref<2x16x32xf32, #tpu.memory_space<vmem>>, vector<2x16x32xf32>
    %c0_2 = arith.constant 0 : index
    %c0_3 = arith.constant 0 : index
    %c0_4 = arith.constant 0 : index
    %1 = vector.load %arg1[%c0_2, %c0_3, %c0_4] : memref<2x256x32xf32, #tpu.memory_space<vmem>>, vector<2x256x32xf32>
    %c0_5 = arith.constant 0 : index
    %c0_6 = arith.constant 0 : index
    %2 = vector.load %arg5[%c0_5, %c0_6] : memref<32x32xf32, #tpu.memory_space<vmem>>, vector<32x32xf32>
    %c0_7 = arith.constant 0 : index
    %c0_8 = arith.constant 0 : index
    %3 = vector.load %arg6[%c0_7, %c0_8] : memref<1x32xf32, #tpu.memory_space<vmem>>, vector<1x32xf32>
    %4 = vector.shape_cast %1 : vector<2x256x32xf32> to vector<512x32xf32>
    %cst = arith.constant dense<0.000000e+00> : vector<512x32xf32>
    %5 = tpu.matmul %4, %2, %cst {dimension_numbers = #tpu.dot_dimension_numbers<[1], [0], [0], [1], [0, 0, 1, 1], [], []>} : vector<512x32xf32>, vector<32x32xf32>, vector<512x32xf32> -> vector<512x32xf32>
    %6 = vector.broadcast %3 : vector<1x32xf32> to vector<512x32xf32>
    %7 = arith.addf %5, %6 : vector<512x32xf32>
    %8 = vector.shape_cast %7 : vector<512x32xf32> to vector<2x256x32xf32>
    %c0_9 = arith.constant 0 : index
    %c0_10 = arith.constant 0 : index
    %9 = vector.load %arg3[%c0_9, %c0_10] : memref<8x32xf32, #tpu.memory_space<vmem>>, vector<8x32xf32>
    %10 = vector.shape_cast %9 : vector<8x32xf32> to vector<1x8x32xf32>
    %11 = vector.shape_cast %10 : vector<1x8x32xf32> to vector<1x8x32xf32>
    %12 = vector.broadcast %11 : vector<1x8x32xf32> to vector<2x8x32xf32>
    %c0_11 = arith.constant 0 : index
    %c0_12 = arith.constant 0 : index
    %13 = vector.load %arg4[%c0_11, %c0_12] : memref<8x4xf32, #tpu.memory_space<vmem>>, vector<8x4xf32>
    %14 = vector.shape_cast %13 : vector<8x4xf32> to vector<1x8x4xf32>
    %15 = vector.shape_cast %14 : vector<1x8x4xf32> to vector<1x8x4xf32>
    %16 = vector.broadcast %15 : vector<1x8x4xf32> to vector<2x8x4xf32>
    %17 = arith.negf %16 : vector<2x8x4xf32>
    %18 = math.exp %17 : vector<2x8x4xf32>
    %cst_13 = arith.constant 1.000000e+00 : f32
    %19 = vector.broadcast %cst_13 : f32 to vector<2x8x4xf32>
    %20 = arith.addf %19, %18 : vector<2x8x4xf32>
    %21 = arith.divf %19, %20 : vector<2x8x4xf32>
    %c0_14 = arith.constant 0 : index
    %c0_15 = arith.constant 0 : index
    %22 = vector.load %arg9[%c0_14, %c0_15] : memref<32x32xf32, #tpu.memory_space<vmem>>, vector<32x32xf32>
    %c0_16 = arith.constant 0 : index
    %c0_17 = arith.constant 0 : index
    %23 = vector.load %arg10[%c0_16, %c0_17] : memref<1x32xf32, #tpu.memory_space<vmem>>, vector<1x32xf32>
    %c0_18 = arith.constant 0 : index
    %c0_19 = arith.constant 0 : index
    %24 = vector.load %arg11[%c0_18, %c0_19] : memref<32x32xf32, #tpu.memory_space<vmem>>, vector<32x32xf32>
    %c0_20 = arith.constant 0 : index
    %c0_21 = arith.constant 0 : index
    %25 = vector.load %arg12[%c0_20, %c0_21] : memref<1x32xf32, #tpu.memory_space<vmem>>, vector<1x32xf32>
    %c0_22 = arith.constant 0 : index
    %c0_23 = arith.constant 0 : index
    %26 = vector.load %arg13[%c0_22, %c0_23] : memref<32x4xf32, #tpu.memory_space<vmem>>, vector<32x4xf32>
    %c0_24 = arith.constant 0 : index
    %c0_25 = arith.constant 0 : index
    %27 = vector.load %arg14[%c0_24, %c0_25] : memref<1x4xf32, #tpu.memory_space<vmem>>, vector<1x4xf32>
    %cst_26 = arith.constant 0.176776692 : f32
    %28 = vector.broadcast %cst_26 : f32 to vector<2x8x32xf32>
    %29 = arith.mulf %12, %28 : vector<2x8x32xf32>
    "tpu.trace_start"() <{level = 10 : i32, message = "bqd,bkd->bqk"}> : () -> ()
    %cst_27 = arith.constant dense<0.000000e+00> : vector<2x8x16xf32>
    %30 = tpu.matmul %29, %0, %cst_27 {dimension_numbers = #tpu.dot_dimension_numbers<[2], [2], [1], [1], [0, 0, 0, 1, 1, 1], [0], [0]>} : vector<2x8x32xf32>, vector<2x16x32xf32>, vector<2x8x16xf32> -> vector<2x8x16xf32>
    "tpu.trace_stop"() : () -> ()
    %cst_28 = arith.constant dense<0xFF800000> : vector<2x8xf32>
    %31 = vector.multi_reduction <maximumf>, %30, %cst_28 [2] : vector<2x8x16xf32> to vector<2x8xf32>
    %32 = vector.shape_cast %31 : vector<2x8xf32> to vector<2x8x1xf32>
    %33 = vector.broadcast %32 : vector<2x8x1xf32> to vector<2x8x16xf32>
    %34 = arith.subf %30, %33 : vector<2x8x16xf32>
    %35 = math.exp %34 : vector<2x8x16xf32>
    %cst_29 = arith.constant dense<0.000000e+00> : vector<2x8xf32>
    %36 = vector.multi_reduction <add>, %35, %cst_29 [2] : vector<2x8x16xf32> to vector<2x8xf32>
    %37 = vector.shape_cast %36 : vector<2x8xf32> to vector<2x8x1xf32>
    %38 = tpu.reciprocal %37 {approx = true} : vector<2x8x1xf32> -> vector<2x8x1xf32>
    %39 = vector.broadcast %38 : vector<2x8x1xf32> to vector<2x8x16xf32>
    %40 = arith.mulf %35, %39 : vector<2x8x16xf32>
    "tpu.trace_start"() <{level = 10 : i32, message = "bqk,bkd->bqd"}> : () -> ()
    %cst_30 = arith.constant dense<0.000000e+00> : vector<2x8x32xf32>
    %41 = tpu.matmul %40, %0, %cst_30 {dimension_numbers = #tpu.dot_dimension_numbers<[2], [1], [1], [2], [0, 0, 0, 1, 1, 2], [0], [0]>} : vector<2x8x16xf32>, vector<2x16x32xf32>, vector<2x8x32xf32> -> vector<2x8x32xf32>
    "tpu.trace_stop"() : () -> ()
    %c0_31 = arith.constant 0 : index
    %c0_32 = arith.constant 0 : index
    %c0_33 = arith.constant 0 : index
    %42 = vector.load %arg7[%c0_31, %c0_32, %c0_33] : memref<2x32x32xf32, #tpu.memory_space<vmem>>, vector<1x32x32xf32>
    %43 = vector.shape_cast %42 : vector<1x32x32xf32> to vector<32x32xf32>
    %c0_34 = arith.constant 0 : index
    %c0_35 = arith.constant 0 : index
    %c0_36 = arith.constant 0 : index
    %44 = vector.load %arg8[%c0_34, %c0_35, %c0_36] : memref<2x1x32xf32, #tpu.memory_space<vmem>>, vector<1x1x32xf32>
    %45 = vector.shape_cast %44 : vector<1x1x32xf32> to vector<1x32xf32>
    %46 = vector.shape_cast %41 : vector<2x8x32xf32> to vector<16x32xf32>
    %cst_37 = arith.constant dense<0.000000e+00> : vector<16x32xf32>
    %47 = tpu.matmul %46, %43, %cst_37 {dimension_numbers = #tpu.dot_dimension_numbers<[1], [0], [0], [1], [0, 0, 1, 1], [], []>} : vector<16x32xf32>, vector<32x32xf32>, vector<16x32xf32> -> vector<16x32xf32>
    %48 = vector.broadcast %45 : vector<1x32xf32> to vector<16x32xf32>
    %49 = arith.addf %47, %48 : vector<16x32xf32>
    %cst_38 = arith.constant 0.000000e+00 : f32
    %50 = vector.broadcast %cst_38 : f32 to vector<16x32xf32>
    %51 = arith.maximumf %49, %50 : vector<16x32xf32>
    %52 = vector.shape_cast %51 : vector<16x32xf32> to vector<2x8x32xf32>
    %53 = vector.shape_cast %52 : vector<2x8x32xf32> to vector<16x32xf32>
    %cst_39 = arith.constant dense<0.000000e+00> : vector<16x32xf32>
    %54 = tpu.matmul %53, %22, %cst_39 {dimension_numbers = #tpu.dot_dimension_numbers<[1], [0], [0], [1], [0, 0, 1, 1], [], []>} : vector<16x32xf32>, vector<32x32xf32>, vector<16x32xf32> -> vector<16x32xf32>
    %55 = vector.broadcast %23 : vector<1x32xf32> to vector<16x32xf32>
    %56 = arith.addf %54, %55 : vector<16x32xf32>
    %cst_40 = arith.constant 0.000000e+00 : f32
    %57 = vector.broadcast %cst_40 : f32 to vector<16x32xf32>
    %58 = arith.maximumf %56, %57 : vector<16x32xf32>
    %59 = vector.shape_cast %58 : vector<16x32xf32> to vector<2x8x32xf32>
    %60 = vector.shape_cast %59 : vector<2x8x32xf32> to vector<16x32xf32>
    %cst_41 = arith.constant dense<0.000000e+00> : vector<16x32xf32>
    %61 = tpu.matmul %60, %24, %cst_41 {dimension_numbers = #tpu.dot_dimension_numbers<[1], [0], [0], [1], [0, 0, 1, 1], [], []>} : vector<16x32xf32>, vector<32x32xf32>, vector<16x32xf32> -> vector<16x32xf32>
    %62 = vector.broadcast %25 : vector<1x32xf32> to vector<16x32xf32>
    %63 = arith.addf %61, %62 : vector<16x32xf32>
    %cst_42 = arith.constant 0.000000e+00 : f32
    %64 = vector.broadcast %cst_42 : f32 to vector<16x32xf32>
    %65 = arith.maximumf %63, %64 : vector<16x32xf32>
    %66 = vector.shape_cast %65 : vector<16x32xf32> to vector<2x8x32xf32>
    %67 = vector.shape_cast %66 : vector<2x8x32xf32> to vector<16x32xf32>
    %cst_43 = arith.constant dense<0.000000e+00> : vector<16x4xf32>
    %68 = tpu.matmul %67, %26, %cst_43 {dimension_numbers = #tpu.dot_dimension_numbers<[1], [0], [0], [1], [0, 0, 1, 1], [], []>} : vector<16x32xf32>, vector<32x4xf32>, vector<16x4xf32> -> vector<16x4xf32>
    %69 = vector.broadcast %27 : vector<1x4xf32> to vector<16x4xf32>
    %70 = arith.addf %68, %69 : vector<16x4xf32>
    %71 = vector.shape_cast %70 : vector<16x4xf32> to vector<2x8x4xf32>
    %cst_44 = arith.constant 0.000000e+00 : f32
    %cst_45 = arith.constant 1.000000e+00 : f32
    %72 = vector.broadcast %cst_44 : f32 to vector<2x8x4xf32>
    %73 = arith.maximumf %72, %21 : vector<2x8x4xf32>
    %74 = vector.broadcast %cst_45 : f32 to vector<2x8x4xf32>
    %75 = arith.minimumf %74, %73 : vector<2x8x4xf32>
    %cst_46 = arith.constant 1.000000e-03 : f32
    %76 = vector.broadcast %cst_46 : f32 to vector<2x8x4xf32>
    %77 = arith.maximumf %75, %76 : vector<2x8x4xf32>
    %78 = math.log %77 : vector<2x8x4xf32>
    %cst_47 = arith.constant 1.000000e+00 : f32
    %79 = vector.broadcast %cst_47 : f32 to vector<2x8x4xf32>
    %80 = arith.subf %79, %75 : vector<2x8x4xf32>
    %cst_48 = arith.constant 1.000000e-03 : f32
    %81 = vector.broadcast %cst_48 : f32 to vector<2x8x4xf32>
    %82 = arith.maximumf %80, %81 : vector<2x8x4xf32>
    %83 = math.log %82 : vector<2x8x4xf32>
    %84 = arith.subf %78, %83 : vector<2x8x4xf32>
    %85 = arith.addf %71, %84 : vector<2x8x4xf32>
    %86 = arith.negf %85 : vector<2x8x4xf32>
    %87 = math.exp %86 : vector<2x8x4xf32>
    %cst_49 = arith.constant 1.000000e+00 : f32
    %88 = vector.broadcast %cst_49 : f32 to vector<2x8x4xf32>
    %89 = arith.addf %88, %87 : vector<2x8x4xf32>
    %90 = arith.divf %88, %89 : vector<2x8x4xf32>
    %cst_50 = arith.constant 0.176776692 : f32
    %91 = vector.broadcast %cst_50 : f32 to vector<2x8x32xf32>
    %92 = arith.mulf %52, %91 : vector<2x8x32xf32>
    "tpu.trace_start"() <{level = 10 : i32, message = "bqd,bkd->bqk"}> : () -> ()
    %cst_51 = arith.constant dense<0.000000e+00> : vector<2x8x16xf32>
    %93 = tpu.matmul %92, %0, %cst_51 {dimension_numbers = #tpu.dot_dimension_numbers<[2], [2], [1], [1], [0, 0, 0, 1, 1, 1], [0], [0]>} : vector<2x8x32xf32>, vector<2x16x32xf32>, vector<2x8x16xf32> -> vector<2x8x16xf32>
    "tpu.trace_stop"() : () -> ()
    %cst_52 = arith.constant dense<0xFF800000> : vector<2x8xf32>
    %94 = vector.multi_reduction <maximumf>, %93, %cst_52 [2] : vector<2x8x16xf32> to vector<2x8xf32>
    %95 = vector.shape_cast %94 : vector<2x8xf32> to vector<2x8x1xf32>
    %96 = vector.broadcast %95 : vector<2x8x1xf32> to vector<2x8x16xf32>
    %97 = arith.subf %93, %96 : vector<2x8x16xf32>
    %98 = math.exp %97 : vector<2x8x16xf32>
    %cst_53 = arith.constant dense<0.000000e+00> : vector<2x8xf32>
    %99 = vector.multi_reduction <add>, %98, %cst_53 [2] : vector<2x8x16xf32> to vector<2x8xf32>
    %100 = vector.shape_cast %99 : vector<2x8xf32> to vector<2x8x1xf32>
    %101 = tpu.reciprocal %100 {approx = true} : vector<2x8x1xf32> -> vector<2x8x1xf32>
    %102 = vector.broadcast %101 : vector<2x8x1xf32> to vector<2x8x16xf32>
    %103 = arith.mulf %98, %102 : vector<2x8x16xf32>
    "tpu.trace_start"() <{level = 10 : i32, message = "bqk,bkd->bqd"}> : () -> ()
    %cst_54 = arith.constant dense<0.000000e+00> : vector<2x8x32xf32>
    %104 = tpu.matmul %103, %0, %cst_54 {dimension_numbers = #tpu.dot_dimension_numbers<[2], [1], [1], [2], [0, 0, 0, 1, 1, 2], [0], [0]>} : vector<2x8x16xf32>, vector<2x16x32xf32>, vector<2x8x32xf32> -> vector<2x8x32xf32>
    "tpu.trace_stop"() : () -> ()
    %c1 = arith.constant 1 : index
    %c0_55 = arith.constant 0 : index
    %c0_56 = arith.constant 0 : index
    %105 = vector.load %arg7[%c1, %c0_55, %c0_56] : memref<2x32x32xf32, #tpu.memory_space<vmem>>, vector<1x32x32xf32>
    %106 = vector.shape_cast %105 : vector<1x32x32xf32> to vector<32x32xf32>
    %c1_57 = arith.constant 1 : index
    %c0_58 = arith.constant 0 : index
    %c0_59 = arith.constant 0 : index
    %107 = vector.load %arg8[%c1_57, %c0_58, %c0_59] : memref<2x1x32xf32, #tpu.memory_space<vmem>>, vector<1x1x32xf32>
    %108 = vector.shape_cast %107 : vector<1x1x32xf32> to vector<1x32xf32>
    %109 = vector.shape_cast %104 : vector<2x8x32xf32> to vector<16x32xf32>
    %cst_60 = arith.constant dense<0.000000e+00> : vector<16x32xf32>
    %110 = tpu.matmul %109, %106, %cst_60 {dimension_numbers = #tpu.dot_dimension_numbers<[1], [0], [0], [1], [0, 0, 1, 1], [], []>} : vector<16x32xf32>, vector<32x32xf32>, vector<16x32xf32> -> vector<16x32xf32>
    %111 = vector.broadcast %108 : vector<1x32xf32> to vector<16x32xf32>
    %112 = arith.addf %110, %111 : vector<16x32xf32>
    %cst_61 = arith.constant 0.000000e+00 : f32
    %113 = vector.broadcast %cst_61 : f32 to vector<16x32xf32>
    %114 = arith.maximumf %112, %113 : vector<16x32xf32>
    %115 = vector.shape_cast %114 : vector<16x32xf32> to vector<2x8x32xf32>
    %116 = vector.shape_cast %115 : vector<2x8x32xf32> to vector<16x32xf32>
    %cst_62 = arith.constant dense<0.000000e+00> : vector<16x32xf32>
    %117 = tpu.matmul %116, %22, %cst_62 {dimension_numbers = #tpu.dot_dimension_numbers<[1], [0], [0], [1], [0, 0, 1, 1], [], []>} : vector<16x32xf32>, vector<32x32xf32>, vector<16x32xf32> -> vector<16x32xf32>
    %118 = vector.broadcast %23 : vector<1x32xf32> to vector<16x32xf32>
    %119 = arith.addf %117, %118 : vector<16x32xf32>
    %cst_63 = arith.constant 0.000000e+00 : f32
    %120 = vector.broadcast %cst_63 : f32 to vector<16x32xf32>
    %121 = arith.maximumf %119, %120 : vector<16x32xf32>
    %122 = vector.shape_cast %121 : vector<16x32xf32> to vector<2x8x32xf32>
    %123 = vector.shape_cast %122 : vector<2x8x32xf32> to vector<16x32xf32>
    %cst_64 = arith.constant dense<0.000000e+00> : vector<16x32xf32>
    %124 = tpu.matmul %123, %24, %cst_64 {dimension_numbers = #tpu.dot_dimension_numbers<[1], [0], [0], [1], [0, 0, 1, 1], [], []>} : vector<16x32xf32>, vector<32x32xf32>, vector<16x32xf32> -> vector<16x32xf32>
    %125 = vector.broadcast %25 : vector<1x32xf32> to vector<16x32xf32>
    %126 = arith.addf %124, %125 : vector<16x32xf32>
    %cst_65 = arith.constant 0.000000e+00 : f32
    %127 = vector.broadcast %cst_65 : f32 to vector<16x32xf32>
    %128 = arith.maximumf %126, %127 : vector<16x32xf32>
    %129 = vector.shape_cast %128 : vector<16x32xf32> to vector<2x8x32xf32>
    %130 = vector.shape_cast %129 : vector<2x8x32xf32> to vector<16x32xf32>
    %cst_66 = arith.constant dense<0.000000e+00> : vector<16x4xf32>
    %131 = tpu.matmul %130, %26, %cst_66 {dimension_numbers = #tpu.dot_dimension_numbers<[1], [0], [0], [1], [0, 0, 1, 1], [], []>} : vector<16x32xf32>, vector<32x4xf32>, vector<16x4xf32> -> vector<16x4xf32>
    %132 = vector.broadcast %27 : vector<1x4xf32> to vector<16x4xf32>
    %133 = arith.addf %131, %132 : vector<16x4xf32>
    %134 = vector.shape_cast %133 : vector<16x4xf32> to vector<2x8x4xf32>
    %cst_67 = arith.constant 0.000000e+00 : f32
    %cst_68 = arith.constant 1.000000e+00 : f32
    %135 = vector.broadcast %cst_67 : f32 to vector<2x8x4xf32>
    %136 = arith.maximumf %135, %90 : vector<2x8x4xf32>
    %137 = vector.broadcast %cst_68 : f32 to vector<2x8x4xf32>
    %138 = arith.minimumf %137, %136 : vector<2x8x4xf32>
    %cst_69 = arith.constant 1.000000e-03 : f32
    %139 = vector.broadcast %cst_69 : f32 to vector<2x8x4xf32>
    %140 = arith.maximumf %138, %139 : vector<2x8x4xf32>
    %141 = math.log %140 : vector<2x8x4xf32>
    %cst_70 = arith.constant 1.000000e+00 : f32
    %142 = vector.broadcast %cst_70 : f32 to vector<2x8x4xf32>
    %143 = arith.subf %142, %138 : vector<2x8x4xf32>
    %cst_71 = arith.constant 1.000000e-03 : f32
    %144 = vector.broadcast %cst_71 : f32 to vector<2x8x4xf32>
    %145 = arith.maximumf %143, %144 : vector<2x8x4xf32>
    %146 = math.log %145 : vector<2x8x4xf32>
    %147 = arith.subf %141, %146 : vector<2x8x4xf32>
    %148 = arith.addf %134, %147 : vector<2x8x4xf32>
    %149 = arith.negf %148 : vector<2x8x4xf32>
    %150 = math.exp %149 : vector<2x8x4xf32>
    %cst_72 = arith.constant 1.000000e+00 : f32
    %151 = vector.broadcast %cst_72 : f32 to vector<2x8x4xf32>
    %152 = arith.addf %151, %150 : vector<2x8x4xf32>
    %153 = arith.divf %151, %152 : vector<2x8x4xf32>
    %c0_73 = arith.constant 0 : index
    %c0_74 = arith.constant 0 : index
    %c0_75 = arith.constant 0 : index
    %154 = vector.load %arg16[%c0_73, %c0_74, %c0_75] : memref<2x8x4xf32, #tpu.memory_space<vmem>>, vector<2x8x4xf32>
    tpu.vector_store %arg16[%c0_73, %c0_74, %c0_75], %153 {strides = array<i32>} : memref<2x8x4xf32, #tpu.memory_space<vmem>>, vector<2x8x4xf32>,
    "tpu.trace_start"() <{level = 10 : i32, message = "bqd,bld->bql"}> : () -> ()
    %cst_76 = arith.constant dense<0.000000e+00> : vector<2x8x256xf32>
    %155 = tpu.matmul %115, %8, %cst_76 {dimension_numbers = #tpu.dot_dimension_numbers<[2], [2], [1], [1], [0, 0, 0, 1, 1, 1], [0], [0]>} : vector<2x8x32xf32>, vector<2x256x32xf32>, vector<2x8x256xf32> -> vector<2x8x256xf32>
    "tpu.trace_stop"() : () -> ()
    %c0_77 = arith.constant 0 : index
    %c0_78 = arith.constant 0 : index
    %c0_79 = arith.constant 0 : index
    %156 = vector.load %arg2[%c0_77, %c0_78, %c0_79] : memref<2x1x256xf32, #tpu.memory_space<vmem>>, vector<2x1x256xf32>
    %cst_80 = arith.constant 5.000000e-01 : f32
    %157 = vector.broadcast %cst_80 : f32 to vector<2x1x256xf32>
    %158 = arith.cmpf ogt, %156, %157 : vector<2x1x256xf32>
    %cst_81 = arith.constant 0xFF800000 : f32
    %159 = vector.shape_cast %158 : vector<2x1x256xi1> to vector<2x1x256xi1>
    %160 = vector.broadcast %159 : vector<2x1x256xi1> to vector<2x8x256xi1>
    %161 = vector.broadcast %cst_81 : f32 to vector<2x8x256xf32>
    %162 = arith.select %160, %155, %161 : vector<2x8x256xi1>, vector<2x8x256xf32>
    %c0_82 = arith.constant 0 : index
    %c0_83 = arith.constant 0 : index
    %c0_84 = arith.constant 0 : index
    %163 = vector.load %arg15[%c0_82, %c0_83, %c0_84] : memref<2x8x256xf32, #tpu.memory_space<vmem>>, vector<2x8x256xf32>
    tpu.vector_store %arg15[%c0_82, %c0_83, %c0_84], %162 {strides = array<i32>} : memref<2x8x256xf32, #tpu.memory_space<vmem>>, vector<2x8x256xf32>,
    return
  }
}

</mosaic_0001>

<bundles_post_ra>
// kernel: sam_forward.2
= control target key start
LH: loop header
LB: loop body
LE: loop exit
PB: predicated region body
PF: predicated region fallthrough
CT: control target
= control target key end

     0   :  { %v936_v0 = vmov 0.0|0.0   ;;  %vm65_vm0 = vcmask 523264   ;;  %vm167_vm1 = vcmask 392192   ;;  %vm342_vm3 = vcmask 130048   ;;  %s1191_s1 = inlined_call_operand.vmem [shape: f32[192,48], index: 1, kind: input, shape index: {}]   ;;  %s1192_s0 = inlined_call_operand.vmem [shape: f32[2,16,192], index: 0, kind: input, shape index: {}]   ;;  %s1193_s2 = inlined_call_operand.vmem [shape: f32[1,48], index: 2, kind: input, shape index: {}]   ;;  %s1194_s3 = inlined_call_operand.vmem [shape: f32[48,32], index: 3, kind: input, shape index: {}]   ;;  %s1195_s4 = inlined_call_operand.vmem [shape: f32[1,32], index: 4, kind: input, shape index: {}]   ;;  %s1196_s5 = inlined_call_operand.vmem [shape: f32[1,32], index: 5, kind: input, shape index: {}]   ;;  %s1197_s6 = inlined_call_operand.vmem [shape: f32[1,32], index: 6, kind: input, shape index: {}]   ;;  %s1198_s7 = inlined_call_operand.vmem [shape: f32[2,16,32], index: 7, kind: output, shape index: {}]  }
   0x1   :  { %847 = vmatprep.subr.bf16.mxu0 %v936_v0  ;;  %v34_v1 = vld [vmem:[%s1191_s1] sm:$0xff]  ;;  %v35_v2 = vld [vmem:[%s1191_s1 + $0x8] sm:$0xff]  ;;  %v36_v3 = vld [vmem:[%s1191_s1 + $0x10] sm:$0xff]  ;;  %vm663_vm4 = vcmask 261120  }
   0x2   :  { %v848_v4 = vpack.c.bf16 %v35_v2, %v34_v1  ;;  %v37_v5 = vld [vmem:[%s1191_s1 + $0x18] sm:$0xff]  ;;  %v38_v7 = vld [vmem:[%s1191_s1 + $0x20] sm:$0xff]  ;;  %v39_v8 = vld [vmem:[%s1191_s1 + $0x28] sm:$0xff] }
   0x3   :  { %v851_v6 = vpack.c.bf16 %v37_v5, %v36_v3  ;;  %v854_v9 = vpack.c.bf16 %v39_v8, %v38_v7  ;;  %v40_v10 = vld [vmem:[%s1191_s1 + $0x30] sm:$0xff]  ;;  %v41_v11 = vld [vmem:[%s1191_s1 + $0x38] sm:$0xff]  ;;  %v27_v12 = vld [vmem:[%s1192_s0 + $0x8] sm:$0xff] }
   0x4   :  { %849 = vmatpush1.bf16.msra.mxu0 %v848_v4  ;;  %752 = vmatprep.mubr.msk.f32.mxu0 %vm65_vm0, %v27_v12  ;;  %v857_v13 = vpack.c.bf16 %v41_v11, %v40_v10  ;;  %v42_v14 = vld [vmem:[%s1191_s1 + $0x40] sm:$0xff]  ;;  %v43_v15 = vld [vmem:[%s1191_s1 + $0x48] sm:$0xff]  ;;  %v44_v17 = vld [vmem:[%s1191_s1 + $0x50] sm:$0xff] }
   0x5   :  { %850 = vmatprep.subr.bf16.mxu0 %v936_v0  ;;  %v860_v16 = vpack.c.bf16 %v43_v15, %v42_v14  ;;  %v45_v18 = vld [vmem:[%s1191_s1 + $0x58] sm:$0xff]  ;;  %v46_v20 = vld [vmem:[%s1191_s1 + $0x60] sm:$0xff]  ;;  %v47_v21 = vld [vmem:[%s1191_s1 + $0x68] sm:$0xff] }
   0x6   :  { %v863_v19 = vpack.c.bf16 %v45_v18, %v44_v17  ;;  %v866_v22 = vpack.c.bf16 %v47_v21, %v46_v20  ;;  %v48_v23 = vld [vmem:[%s1191_s1 + $0x70] sm:$0xff]  ;;  %v49_v24 = vld [vmem:[%s1191_s1 + $0x78] sm:$0xff]  ;;  %v50_v26 = vld [vmem:[%s1191_s1 + $0x80] sm:$0xff] }
   0x7   :  { %v869_v25 = vpack.c.bf16 %v49_v24, %v48_v23  ;;  %v51_v27 = vld [vmem:[%s1191_s1 + $0x88] sm:$0xff]  ;;  %v52_v29 = vld [vmem:[%s1191_s1 + $0x90] sm:$0xff]  ;;  %v53_v30 = vld [vmem:[%s1191_s1 + $0x98] sm:$0xff] }
   0x8   :  { %852 = vmatpush1.bf16.msra.mxu0 %v851_v6  ;;  %v872_v28 = vpack.c.bf16 %v51_v27, %v50_v26  ;;  %v875_v31 = vpack.c.bf16 %v53_v30, %v52_v29  ;;  %v54_v32 = vld [vmem:[%s1191_s1 + $0xa0] sm:$0xff]  ;;  %v55_v33 = vld [vmem:[%s1191_s1 + $0xa8] sm:$0xff]  ;;  %v56_v35 = vld [vmem:[%s1191_s1 + $0xb0] sm:$0xff] }
   0x9   :  { %853 = vmatprep.subr.bf16.mxu0 %v936_v0  ;;  %v878_v34 = vpack.c.bf16 %v55_v33, %v54_v32  ;;  %v57_v36 = vld [vmem:[%s1191_s1 + $0xb8] sm:$0xff]  ;;  %v26_v38 = vld [vmem:[%s1192_s0] sm:$0xff]  ;;  %v28_v40 = vld [vmem:[%s1192_s0 + $0x10] sm:$0xff] }
   0xa   :  { %v881_v37 = vpack.c.bf16 %v57_v36, %v56_v35  ;;  %v29_v39 = vld [vmem:[%s1192_s0 + $0x18] sm:$0xff]  ;;  %v31_v41 = vld [vmem:[%s1192_s0 + $0x28] sm:$0xff]  ;;  %v30_v42 = vld [vmem:[%s1192_s0 + $0x20] sm:$0xff] }
   0xb   :  { %v33_v43 = vld [vmem:[%s1192_s0 + $0x38] sm:$0xff]  ;;  %v32_v44 = vld [vmem:[%s1192_s0 + $0x30] sm:$0xff]  ;;  %v751_v45 = vld [vmem:[%s1193_s2] ss:$0 sm:$0xff] }
   0xc   :  { %855 = vmatpush1.bf16.msra.mxu0 %v854_v9  ;;  %vm884_vm2 = vmpackc.low %vm167_vm1, %vm167_vm1  ;;  %v554_v35 = vld [vmem:[%s1194_s3 + $0x8] sm:$0xff] }
   0xd   :  { %856 = vmatprep.subr.bf16.mxu0 %v936_v0 }
  0x10   :  { %858 = vmatpush1.bf16.msra.mxu0 %v857_v13 }
  0x11   :  { %859 = vmatprep.subr.bf16.mxu0 %v936_v0 }
  0x14   :  { %861 = vmatpush1.bf16.msra.mxu0 %v860_v16 }
  0x15   :  { %862 = vmatprep.subr.bf16.mxu0 %v936_v0 }
  0x18   :  { %864 = vmatpush1.bf16.msra.mxu0 %v863_v19 }
  0x19   :  { %865 = vmatprep.subr.bf16.mxu0 %v936_v0 }
  0x1c   :  { %867 = vmatpush1.bf16.msra.mxu0 %v866_v22 }
  0x1d   :  { %868 = vmatprep.subr.bf16.mxu0 %v936_v0 }
  0x20   :  { %870 = vmatpush1.bf16.msra.mxu0 %v869_v25 }
  0x21   :  { %871 = vmatprep.subr.bf16.mxu0 %v936_v0 }
  0x24   :  { %873 = vmatpush1.bf16.msra.mxu0 %v872_v28 }
  0x25   :  { %874 = vmatprep.subr.bf16.mxu0 %v936_v0 }
  0x28   :  { %876 = vmatpush1.bf16.msra.mxu0 %v875_v31 }
  0x29   :  { %877 = vmatprep.subr.bf16.mxu0 %v936_v0 }
  0x2c   :  { %879 = vmatpush1.bf16.msra.mxu0 %v878_v34  ;;  %v553_v34 = vld [vmem:[%s1194_s3] sm:$0xff] }
  0x2d   :  { %880 = vmatprep.subr.bf16.mxu0 %v936_v0 }
  0x30   :  { %882 = vmatpush1.bf16.msra.mxu0 %v881_v37 }
  0x33   :  { %143 = vmatmul.mubr.f32.vlgmr.msra.gmra.mrb[0].mxu0 %v26_v38  ;;  %v903_v38 = vpack.c.bf16 %v554_v35, %v553_v34 }
  0x34   :  { %753 = vmatprep.mubr.msk.f32.mxu0 %vm65_vm0, %v29_v39 }
  0x37   :  { %148 = vmatmul.mubr.f32.gmra.mrb[2].mxu0 %v28_v40 }
  0x38   :  { %754 = vmatprep.mubr.msk.f32.mxu0 %vm65_vm0, %v31_v41  ;;  %v555_v41 = vld [vmem:[%s1194_s3 + $0x10] sm:$0xff] }
  0x3b   :  { %153 = vmatmul.mubr.f32.gmra.mrb[4].mxu0 %v30_v42  ;;  %v556_v42 = vld [vmem:[%s1194_s3 + $0x18] sm:$0xff] }
  0x3c   :  { %755 = vmatprep.mubr.msk.f32.mxu0 %vm65_vm0, %v33_v43 }
  0x3f   :  { %158 = vmatmul.mubr.f32.gmra.mrb[6].mxu0 %v32_v44 }
 0x106   :  { %v144_v46 = vpop.f32.mrb[0].mxu0 }
 0x107   :  { %v1092_v47 = vadd.f32 %v751_v45, %v144_v46  ;;  %v146_v48 = vpop.f32.mrb[1].mxu0  ;;  %v557_v46 = vld [vmem:[%s1194_s3 + $0x20] sm:$0xff] }
 0x108   :  { %v558_v48 = vld [vmem:[%s1194_s3 + $0x28] sm:$0xff] }
 0x109   :  { %v163_v49 = vmul.f32 0.14433756, %v1092_v47 }
 0x10a   :  { %v149_v50 = vpop.f32.mrb[2].mxu0 }
 0x10b   :  { %v1095_v51 = vadd.f32 %v751_v45, %v149_v50  ;;  %v151_v52 = vpop.f32.mrb[3].mxu0  ;;  %805 = vmatprep.mubr.msk.f32.mxu1 %vm167_vm1, %v163_v49  ;;  %v911_v49 = vpack.c.bf16 %v558_v48, %v557_v46 }
 0x10d   :  { %v883_v53 = vpack.c.bf16 %v1095_v51, %v1092_v47  ;;  %v164_v60 = vmul.f32 0.14433756, %v1095_v51 }
 0x10e   :  { %v154_v54 = vpop.f32.mrb[4].mxu0 }
 0x10f   :  { %v156_v55 = vpop.f32.mrb[5].mxu0  ;;  %885 = vmatprep.subr.msk.bf16.mxu1 %vm884_vm2, %v883_v53  ;;  %v1102_v56 = vadd.f32 %v751_v45, %v154_v54 }
 0x110   :  { %888 = vmatpush3.bf16.xpose.msk.msra.mxu1 %vm884_vm2, %v883_v53 }
 0x111   :  { %v165_v62 = vmul.f32 0.14433756, %v1102_v56 }
 0x112   :  { %v159_v57 = vpop.f32.mrb[6].mxu0 }
 0x113   :  { %v1104_v58 = vadd.f32 %v751_v45, %v159_v57  ;;  %v161_v59 = vpop.f32.mrb[7].mxu0  ;;  %v907_v45 = vpack.c.bf16 %v556_v42, %v555_v41 }
 0x115   :  { %v1109_v61 = vpack.c.bf16 %v1104_v58, %v1102_v56  ;;  %v166_v63 = vmul.f32 0.14433756, %v1104_v58 }
 0x117   :  { %806 = vmatmul.mubr.msk.f32.vlgmr.msra.gmra.mrb[0].mxu1 %vm167_vm1, %v164_v60  ;;  %891 = vmatprep.subr.msk.bf16.mxu1 %vm884_vm2, %v1109_v61 }
 0x118   :  { %894 = vmatpush3.bf16.xpose.msk.msra.mxu1 %vm884_vm2, %v1109_v61  ;;  %812 = vmatprep.mubr.msk.f32.mxu1 %vm167_vm1, %v165_v62 }
 0x119   :  { %896 = vmatprep.subr.bf16.mxu1 %v883_v53 }
 0x11f   :  { %813 = vmatmul.mubr.msk.f32.vlgmr.msra.gmra.mrb[2].mxu1 %vm167_vm1, %v166_v63 }
 0x120   :  { %898 = vmatpush3.bf16.msra.mxu1 %v883_v53 }
 0x121   :  { %900 = vmatprep.subr.bf16.mxu1 %v1109_v61 }
 0x1ea   :  { %v807_v0 = vpop.f32.mrb[0].mxu1 }
 0x1eb   :  { %v246_v1 = vpop.f32.mrb[1].mxu1  ;;  %v346_v3 = vsel %vm342_vm3, %v807_v0, -inf }
 0x1ec   :  { %v343_v2 = vsel %vm342_vm3, %v246_v1, -inf }
 0x1ed   :  { %344 = vmax.xlane.f32.xlu0 %v343_v2 }
 0x1f1   :  { %347 = vmax.xlane.f32.xlu0 %v346_v3 }
 0x1f2   :  { %v814_v4 = vpop.f32.mrb[2].mxu1 }
 0x1f3   :  { %v333_v5 = vpop.f32.mrb[3].mxu1  ;;  %v352_v7 = vsel %vm342_vm3, %v814_v4, -inf }
 0x1f4   :  { %v349_v6 = vsel %vm342_vm3, %v333_v5, -inf }
 0x1f5   :  { %350 = vmax.xlane.f32.xlu1 %v349_v6 }
 0x1f9   :  { %353 = vmax.xlane.f32.xlu1 %v352_v7 }
 0x27a   :  { %v345_v8 = vpop.xlane.xlu0 %344 }
 0x27b   :  { %v355_v9 = vsub.f32 %v246_v1, %v345_v8 }
 0x27d   :  { %v359_v10 = vmul.f32 1.442695, %v355_v9 }
 0x27e   :  { %v348_v11 = vpop.xlane.xlu0 %347 }
 0x27f   :  { %916 = vpow2.f32 %v359_v10  ;;  %v356_v12 = vsub.f32 %v807_v0, %v348_v11 }
 0x281   :  { %v361_v13 = vmul.f32 1.442695, %v356_v12 }
 0x282   :  { %v351_v14 = vpop.xlane.xlu1 %350 }
 0x283   :  { %918 = vpow2.f32 %v361_v13  ;;  %v357_v15 = vsub.f32 %v333_v5, %v351_v14 }
 0x285   :  { %v363_v16 = vmul.f32 1.442695, %v357_v15 }
 0x286   :  { %v354_v17 = vpop.xlane.xlu1 %353 }
 0x287   :  { %920 = vpow2.f32 %v363_v16  ;;  %v358_v18 = vsub.f32 %v814_v4, %v354_v17 }
 0x289   :  { %v917_v19 = vpop.eup %916  ;;  %v365_v20 = vmul.f32 1.442695, %v358_v18 }
 0x28a   :  { %v367_v21 = vsel %vm342_vm3, %v917_v19, 0.0 }
 0x28b   :  { %922 = vpow2.f32 %v365_v20  ;;  %368 = vadd.xlane.f32.xlu0 %v367_v21 }
 0x28d   :  { %v919_v22 = vpop.eup %918 }
 0x28e   :  { %v370_v23 = vsel %vm342_vm3, %v919_v22, 0.0 }
 0x28f   :  { %371 = vadd.xlane.f32.xlu1 %v370_v23 }
 0x291   :  { %v921_v24 = vpop.eup %920 }
 0x292   :  { %v373_v25 = vsel %vm342_vm3, %v921_v24, 0.0 }
 0x293   :  { %374 = vadd.xlane.f32.xlu0 %v373_v25 }
 0x295   :  { %v923_v26 = vpop.eup %922 }
 0x296   :  { %v376_v27 = vsel %vm342_vm3, %v923_v26, 0.0 }
 0x297   :  { %377 = vadd.xlane.f32.xlu1 %v376_v27 }
 0x318   :  { %v369_v28 = vpop.xlane.xlu0 %368 }
 0x319   :  { %924 = vrcp.f32 %v369_v28 }
 0x31c   :  { %v372_v29 = vpop.xlane.xlu1 %371 }
 0x31d   :  { %926 = vrcp.f32 %v372_v29 }
 0x320   :  { %v375_v30 = vpop.xlane.xlu0 %374 }
 0x321   :  { %928 = vrcp.f32 %v375_v30 }
 0x323   :  { %v925_v31 = vpop.eup %924 }
 0x324   :  { %v378_v32 = vpop.xlane.xlu1 %377  ;;  %v383_v33 = vmul.f32 %v925_v31, %v917_v19 }
 0x325   :  { %930 = vrcp.f32 %v378_v32 }
 0x326   :  { %819 = vmatprep.mubr.msk.f32.mxu1 %vm342_vm3, %v383_v33 }
 0x327   :  { %v927_v36 = vpop.eup %926 }
 0x328   :  { %v384_v37 = vmul.f32 %v927_v36, %v919_v22 }
 0x32a   :  { %820 = vmatmul.mubr.msk.f32.vlgmr.msra.gmra.mrb[4].mxu1 %vm342_vm3, %v384_v37 }
 0x32b   :  { %v929_v39 = vpop.eup %928  ;;  %902 = vmatpush3.bf16.msra.mxu1 %v1109_v61 }
 0x32c   :  { %v385_v40 = vmul.f32 %v929_v39, %v921_v24  ;;  %904 = vmatprep.subr.bf16.mxu1 %v903_v38 }
 0x32e   :  { %826 = vmatprep.mubr.msk.f32.mxu1 %vm342_vm3, %v385_v40 }
 0x32f   :  { %v931_v43 = vpop.eup %930 }
 0x330   :  { %v386_v44 = vmul.f32 %v931_v43, %v923_v26 }
 0x332   :  { %827 = vmatmul.mubr.msk.f32.vlgmr.msra.gmra.mrb[6].mxu1 %vm342_vm3, %v386_v44 }
 0x333   :  { %906 = vmatpush3.bf16.msra.mxu1 %v903_v38 }
 0x334   :  { %908 = vmatprep.subr.bf16.mxu1 %v907_v45 }
 0x337   :  { %910 = vmatpush3.bf16.msra.mxu1 %v907_v45 }
 0x338   :  { %912 = vmatprep.subr.bf16.mxu1 %v911_v49 }
 0x33b   :  { %914 = vmatpush3.bf16.msra.mxu1 %v911_v49 }
 0x3fd   :  { %v821_v50 = vpop.f32.mrb[4].mxu1 }
 0x3fe   :  { %v459_v52 = vpop.f32.mrb[5].mxu1  ;;  %v550_v54 = vadd.f32 %v821_v50, %v1095_v51 }
 0x3ff   :  { %v549_v53 = vadd.f32 %v459_v52, %v1092_v47  ;;  %v768_v47 = vld [vmem:[%s1195_s4] ss:$0 sm:$0xff] }
 0x401   :  { %841 = vmatprep.mubr.msk.f32.mxu1 %vm167_vm1, %v549_v53 }
 0x402   :  { %842 = vmatmul.mubr.msk.f32.vlgmr.msra.gmra.mrb[8].mxu1 %vm167_vm1, %v550_v54 }
 0x405   :  { %v828_v55 = vpop.f32.mrb[6].mxu1 }
 0x406   :  { %v540_v57 = vpop.f32.mrb[7].mxu1  ;;  %v552_v60 = vadd.f32 %v828_v55, %v1104_v58  ;;  %v773_v55 = vld [vmem:[%s1196_s5] ss:$0 sm:$0xff] }
 0x407   :  { %v551_v59 = vadd.f32 %v540_v57, %v1102_v56 }
 0x409   :  { %844 = vmatprep.mubr.msk.f32.mxu1 %vm167_vm1, %v551_v59 }
 0x40a   :  { %845 = vmatmul.mubr.msk.f32.gmra.mrb[10].mxu1 %vm167_vm1, %v552_v60  ;;  %v774_v60 = vld [vmem:[%s1197_s6] ss:$0 sm:$0xff] }
 0x4d5   :  { %v843_v61 = vpop.f32.mrb[8].mxu1 }
 0x4d6   :  { %v650_v51 = vadd.f32 %v843_v61, %v768_v47  ;;  %v644_v62 = vpop.f32.mrb[9].mxu1 }
 0x4d7   :  { %v645_v63 = vadd.f32 %v768_v47, %v644_v62 }
 0x4d8   :  { %v665_v0 = vsel %vm663_vm4, %v650_v51, 0.0 }
 0x4d9   :  { %v664_v1 = vsel %vm663_vm4, %v645_v63, 0.0 }
 0x4da   :  { %v666_v56 = vadd.f32 %v665_v0, %v664_v1 }
 0x4dc   :  { %v667_v2 = vrot.slane %v666_v56, 4 }
 0x4dd   :  { %v846_v58 = vpop.f32.mrb[10].mxu1 }
 0x4de   :  { %v668_v3 = vadd.f32 %v667_v2, %v666_v56  ;;  %v660_v4 = vadd.f32 %v846_v58, %v768_v47  ;;  %v654_v5 = vpop.f32.mrb[11].mxu1 }
 0x4df   :  { %v655_v6 = vadd.f32 %v768_v47, %v654_v5 }
 0x4e0   :  { %v669_v7 = vrot.slane %v668_v3, 2  ;;  %v674_v8 = vsel %vm663_vm4, %v660_v4, 0.0 }
 0x4e1   :  { %v673_v9 = vsel %vm663_vm4, %v655_v6, 0.0 }
 0x4e2   :  { %v670_v10 = vadd.f32 %v669_v7, %v668_v3  ;;  %v675_v11 = vadd.f32 %v674_v8, %v673_v9 }
 0x4e4   :  { %v671_v12 = vrot.slane %v670_v10, 1  ;;  %v676_v13 = vrot.slane %v675_v11, 4 }
 0x4e6   :  { %v672_v14 = vadd.f32 %v671_v12, %v670_v10  ;;  %v677_v15 = vadd.f32 %v676_v13, %v675_v11 }
 0x4e8   :  { %v683_v16 = vmul.f32 0.0625, %v672_v14  ;;  %v678_v17 = vrot.slane %v677_v15, 2 }
 0x4ea   :  { %v685_v18 = vsub.f32 %v645_v63, %v683_v16  ;;  %v686_v19 = vsub.f32 %v650_v51, %v683_v16  ;;  %v679_v20 = vadd.f32 %v678_v17, %v677_v15 }
 0x4ec   :  { %v689_v21 = vmul.f32 %v685_v18, %v685_v18  ;;  %v690_v22 = vmul.f32 %v686_v19, %v686_v19  ;;  %v680_v23 = vrot.slane %v679_v20, 1 }
 0x4ee   :  { %v693_v24 = vsel %vm663_vm4, %v689_v21, 0.0  ;;  %v694_v25 = vsel %vm663_vm4, %v690_v22, 0.0  ;;  %v681_v26 = vadd.f32 %v680_v23, %v679_v20 }
 0x4ef   :  { %v695_v27 = vadd.f32 %v694_v25, %v693_v24 }
 0x4f0   :  { %v684_v28 = vmul.f32 0.0625, %v681_v26 }
 0x4f1   :  { %v696_v29 = vrot.slane %v695_v27, 4 }
 0x4f2   :  { %v687_v30 = vsub.f32 %v655_v6, %v684_v28  ;;  %v688_v31 = vsub.f32 %v660_v4, %v684_v28 }
 0x4f3   :  { %v697_v32 = vadd.f32 %v696_v29, %v695_v27 }
 0x4f4   :  { %v691_v33 = vmul.f32 %v687_v30, %v687_v30  ;;  %v692_v34 = vmul.f32 %v688_v31, %v688_v31 }
 0x4f5   :  { %v698_v35 = vrot.slane %v697_v32, 2 }
 0x4f6   :  { %v702_v36 = vsel %vm663_vm4, %v691_v33, 0.0  ;;  %v703_v37 = vsel %vm663_vm4, %v692_v34, 0.0 }
 0x4f7   :  { %v699_v38 = vadd.f32 %v698_v35, %v697_v32  ;;  %v704_v39 = vadd.f32 %v703_v37, %v702_v36 }
 0x4f9   :  { %v700_v40 = vrot.slane %v699_v38, 1  ;;  %v705_v41 = vrot.slane %v704_v39, 4 }
 0x4fb   :  { %v701_v42 = vadd.f32 %v700_v40, %v699_v38  ;;  %v706_v43 = vadd.f32 %v705_v41, %v704_v39 }
 0x4fd   :  { %v711_v44 = vmul.f32 0.0625, %v701_v42  ;;  %v707_v45 = vrot.slane %v706_v43, 2 }
 0x4ff   :  { %v713_v46 = vadd.f32 1e-05, %v711_v44  ;;  %v708_v48 = vadd.f32 %v707_v45, %v706_v43 }
 0x501   :  { %932 = vrsqrt.f32 %v713_v46  ;;  %v709_v49 = vrot.slane %v708_v48, 1 }
 0x503   :  { %v710_v50 = vadd.f32 %v709_v49, %v708_v48 }
 0x505   :  { %v712_v52 = vmul.f32 0.0625, %v710_v50 }
 0x507   :  { %v714_v53 = vadd.f32 1e-05, %v712_v52 }
 0x509   :  { %934 = vrsqrt.f32 %v714_v53 }
 0x50b   :  { %v933_v54 = vpop.eup %932 }
 0x50c   :  { %v717_v57 = vmul.f32 %v933_v54, %v685_v18  ;;  %v718_v59 = vmul.f32 %v933_v54, %v686_v19 }
 0x50e   :  { %v728_v47 = vmul.f32 %v773_v55, %v717_v57  ;;  %v729_v61 = vmul.f32 %v773_v55, %v718_v59 }
 0x510   :  { %v739_v51 = vadd.f32 %v774_v60, %v728_v47  ;;  %v740_v62 = vadd.f32 %v774_v60, %v729_v61 }
 0x512   :  { %743 = vst.msk [vmem:[%s1198_s7] sm:$0xff] %vm663_vm4, %v739_v51  ;;  %744 = vst.msk [vmem:[%s1198_s7 + $0x8] sm:$0xff] %vm663_vm4, %v740_v62 }
 0x513   :  { %v935_v63 = vpop.eup %934 }
 0x514   :  { %v719_v0 = vmul.f32 %v935_v63, %v687_v30  ;;  %v720_v1 = vmul.f32 %v935_v63, %v688_v31 }
 0x516   :  { %v730_v56 = vmul.f32 %v773_v55, %v719_v0  ;;  %v731_v2 = vmul.f32 %v773_v55, %v720_v1 }
 0x518   :  { %v741_v58 = vadd.f32 %v774_v60, %v730_v56  ;;  %v742_v3 = vadd.f32 %v774_v60, %v731_v2 }
 0x51a   :  { %745 = vst.msk [vmem:[%s1198_s7 + $0x10] sm:$0xff] %vm663_vm4, %v741_v58  ;;  %746 = vst.msk [vmem:[%s1198_s7 + $0x18] sm:$0xff] %vm663_vm4, %v742_v3 }

// kernel: sam_forward.3
= control target key start
LH: loop header
LB: loop body
LE: loop exit
PB: predicated region body
PF: predicated region fallthrough
CT: control target
= control target key end

     0   :  { %s4418_s0 = inlined_call_operand.vmem [shape: f32[2,16,32], index: 0, kind: input, shape index: {}]   ;;  %s4419_s1 = inlined_call_operand.vmem [shape: f32[2,256,32], index: 1, kind: input, shape index: {}]   ;;  %s4420_s2 = inlined_call_operand.vmem [shape: f32[2,1,256], index: 2, kind: input, shape index: {}]   ;;  %s4421_s3 = inlined_call_operand.vmem [shape: f32[8,32], index: 3, kind: input, shape index: {}]   ;;  %s4422_s4 = inlined_call_operand.vmem [shape: f32[8,4], index: 4, kind: input, shape index: {}]   ;;  %s4423_s5 = inlined_call_operand.vmem [shape: f32[32,32], index: 5, kind: input, shape index: {}]   ;;  %s4424_s6 = inlined_call_operand.vmem [shape: f32[1,32], index: 6, kind: input, shape index: {}]   ;;  %s4425_s7 = inlined_call_operand.vmem [shape: f32[2,32,32], index: 7, kind: input, shape index: {}]   ;;  %s4426_s8 = inlined_call_operand.vmem [shape: f32[2,1,32], index: 8, kind: input, shape index: {}]   ;;  %s4427_s9 = inlined_call_operand.vmem [shape: f32[32,32], index: 9, kind: input, shape index: {}]   ;;  %s4428_s10 = inlined_call_operand.vmem [shape: f32[1,32], index: 10, kind: input, shape index: {}]   ;;  %s4429_s11 = inlined_call_operand.vmem [shape: f32[32,32], index: 11, kind: input, shape index: {}]   ;;  %s4430_s12 = inlined_call_operand.vmem [shape: f32[1,32], index: 12, kind: input, shape index: {}]   ;;  %s4431_s13 = inlined_call_operand.vmem [shape: f32[32,4], index: 13, kind: input, shape index: {}]   ;;  %s4432_s14 = inlined_call_operand.vmem [shape: f32[1,4], index: 14, kind: input, shape index: {}]   ;;  %s4433_s15 = inlined_call_operand.hbm [shape: f32[2,8,256], index: 15, kind: output, shape index: {0}]   ;;  %s4434_s16 = inlined_call_operand.vmem [shape: f32[2,8,4], index: 16, kind: output, shape index: {1}]  }
   0x1   :  { %4437 = sst [smem:[#allocation5_spill]] %s4418_s0 }
   0x2   :  { %s4438_s23 = sld [smem:[#allocation5_spill]]  ;;  %vm132_vm0 = vcmask 261120   ;;  %v3434_v2 = vmov 0.0|0.0   ;;  %vm3435_vm2 = vmmov 0   ;;  %v3436_v5 = vmov 0.0  }
   0x3   :  { %3167 = vmatprep.subr.bf16.mxu1 %v3434_v2  ;;  %vm3537_vm1 = vmpackc.low %vm132_vm0, %vm132_vm0  ;;  %3019 = vmatprep.mubr.msk.f32.mxu1 %vm3435_vm2, %v3436_v5 }
   0x8   :  { %v53_v0 = vld [vmem:[%s4438_s23] sm:$0xff]  ;;  %v54_v1 = vld [vmem:[%s4438_s23 + $0x8] sm:$0xff] }
   0x9   :  { %v3533_v3 = vpack.c.bf16 %v54_v1, %v53_v0 }
   0xa   :  { %22 = vsyncpa [#allocation3], 0  ;;  %v710_v6 = vld [vmem:[%s4421_s3] sm:$0xff]  ;;  %v55_v7 = vld [vmem:[%s4438_s23 + $0x10] sm:$0xff]  ;;  %vm889_vm3 = vcmask 130048   ;;  %vm2134_vm7 = vcmask 31744  }
   0xb   :  { %3170 = vmatpush3.bf16.xpose.msk.msra.mxu1 %vm3537_vm1, %v3533_v3  ;;  %v56_v8 = vld [vmem:[%s4438_s23 + $0x18] sm:$0xff]  ;;  %v733_v9 = vmul.f32 0.17677669, %v710_v6  ;;  %v1058_v33 = vld [vmem:[%s4425_s7] sm:$0xff]  ;;  %v1059_v34 = vld [vmem:[%s4425_s7 + $0x8] sm:$0xff]  ;;  %s3438_s3 = smov [#allocation2]  }
   0xc   :  { %3171 = vmatprep.subr.bf16.mxu1 %v3434_v2  ;;  %v3556_v10 = vpack.c.bf16 %v56_v8, %v55_v7  ;;  %v3181_v35 = vpack.c.bf16 %v1059_v34, %v1058_v33  ;;  %v1060_v36 = vld [vmem:[%s4425_s7 + $0x10] sm:$0xff]  ;;  %v1061_v37 = vld [vmem:[%s4425_s7 + $0x18] sm:$0xff]  ;;  %v718_v39 = vld [vmem:[%s4427_s9] sm:$0xff] }
   0xd   :  { %v3185_v38 = vpack.c.bf16 %v1061_v37, %v1060_v36  ;;  %v719_v40 = vld [vmem:[%s4427_s9 + $0x8] sm:$0xff]  ;;  %v720_v46 = vld [vmem:[%s4427_s9 + $0x10] sm:$0xff]  ;;  %v721_v47 = vld [vmem:[%s4427_s9 + $0x18] sm:$0xff] }
   0xe   :  { %v3597_v41 = vpack.c.bf16 %v719_v40, %v718_v39  ;;  %v3609_v48 = vpack.c.bf16 %v721_v47, %v720_v46  ;;  %v723_v49 = vld [vmem:[%s4429_s11] sm:$0xff]  ;;  %v724_v50 = vld [vmem:[%s4429_s11 + $0x8] sm:$0xff]  ;;  %v725_v59 = vld [vmem:[%s4429_s11 + $0x10] sm:$0xff] }
   0xf   :  { %v3619_v51 = vpack.c.bf16 %v724_v50, %v723_v49  ;;  %v2599_v52 = vld [vmem:[%s4426_s8] ss:$0 sm:$0xff]  ;;  %v726_v60 = vld [vmem:[%s4429_s11 + $0x18] sm:$0xff]  ;;  %v729_v63 = vld [vmem:[%s4431_s13 + $0x8] sm:$0xff] }
  0x10   :  { %v3634_v61 = vpack.c.bf16 %v726_v60, %v725_v59  ;;  %v728_v62 = vld [vmem:[%s4431_s13] sm:$0xff]  ;;  %v124_v46 = vld [vmem:[%s4423_s5 + $0x18] sm:$0xff]  ;;  %v58_v50 = vld [vmem:[%s4419_s1 + $0x8] sm:$0xff] }
  0x11   :  { %v3644_v0 = vpack.c.bf16 %v729_v63, %v728_v62  ;;  %v3650_v1 = vld [vmem:[%s4428_s10] ss:$0 sm:$0xff]  ;;  %v66_v59 = vld [vmem:[%s4419_s1 + $0x48] sm:$0xff]  ;;  %v67_v60 = vld [vmem:[%s4419_s1 + $0x50] sm:$0xff] }
  0x12   :  { %3020 = vmatmul.mubr.msk.f32.vlgmr.msra.gmra.mrb[0].mxu1 %vm132_vm0, %v733_v9  ;;  %v57_v47 = vld [vmem:[%s4419_s1] sm:$0xff]  ;;  %v68_v62 = vld [vmem:[%s4419_s1 + $0x58] sm:$0xff] }
  0x13   :  { %3174 = vmatpush3.bf16.xpose.msk.msra.mxu1 %vm3537_vm1, %v3556_v10  ;;  %3026 = vmatprep.mubr.msk.f32.mxu1 %vm3435_vm2, %v3436_v5  ;;  %v69_v63 = vld [vmem:[%s4419_s1 + $0x60] sm:$0xff] }
  0x14   :  { %3175 = vmatprep.subr.bf16.mxu1 %v3434_v2  ;;  %2919 = vmatprep.mubr.msk.f32.mxu0 %vm132_vm0, %v57_v47 }
  0x1a   :  { %3027 = vmatmul.mubr.msk.f32.vlgmr.msra.gmra.mrb[2].mxu1 %vm132_vm0, %v733_v9 }
  0x1b   :  { %3177 = vmatpush3.bf16.msra.mxu1 %v3533_v3  ;;  %3033 = vmatprep.mubr.msk.f32.mxu1 %vm3435_vm2, %v3436_v5 }
  0x1c   :  { %3178 = vmatprep.subr.bf16.mxu1 %v3434_v2 }
  0xe5   :  { %v809_v11 = vpop.f32.mrb[0].mxu1 }
  0xe6   :  { %v3021_v12 = vpop.f32.mrb[1].mxu1  ;;  %v890_v13 = vsel %vm889_vm3, %v809_v11, -inf }
  0xe7   :  { %891 = vmax.xlane.f32.xlu0 %v890_v13  ;;  %v731_v12 = vld [vmem:[%s4431_s13 + $0x18] sm:$0xff] }
  0xed   :  { %v885_v14 = vpop.f32.mrb[2].mxu1 }
  0xee   :  { %v3028_v15 = vpop.f32.mrb[3].mxu1  ;;  %v893_v16 = vsel %vm889_vm3, %v885_v14, -inf }
  0xef   :  { %894 = vmax.xlane.f32.xlu0 %v893_v16  ;;  %v3671_v16 = vld [vmem:[%s4430_s12] ss:$0 sm:$0xff] }
 0x174   :  { %v892_v17 = vpop.xlane.xlu0 %891 }
 0x175   :  { %v896_v18 = vsub.f32 %v809_v11, %v892_v17  ;;  %v730_v11 = vld [vmem:[%s4431_s13 + $0x10] sm:$0xff] }
 0x176   :  { %v3660_v15 = vpack.c.bf16 %v731_v12, %v730_v11  ;;  %v74_v11 = vld [vmem:[%s4419_s1 + $0x88] sm:$0xff]  ;;  %v75_v12 = vld [vmem:[%s4419_s1 + $0x90] sm:$0xff] }
 0x177   :  { %v898_v19 = vmul.f32 1.442695, %v896_v18 }
 0x179   :  { %3362 = vpow2.f32 %v898_v19 }
 0x17c   :  { %v895_v20 = vpop.xlane.xlu0 %894 }
 0x17d   :  { %v897_v21 = vsub.f32 %v885_v14, %v895_v20 }
 0x17f   :  { %v900_v22 = vmul.f32 1.442695, %v897_v21 }
 0x181   :  { %3364 = vpow2.f32 %v900_v22 }
 0x183   :  { %v3363_v23 = vpop.eup %3362 }
 0x184   :  { %v902_v24 = vsel %vm889_vm3, %v3363_v23, 0.0 }
 0x185   :  { %903 = vadd.xlane.f32.xlu1 %v902_v24 }
 0x18b   :  { %v3365_v25 = vpop.eup %3364 }
 0x18c   :  { %v905_v26 = vsel %vm889_vm3, %v3365_v25, 0.0 }
 0x18d   :  { %906 = vadd.xlane.f32.xlu1 %v905_v26 }
 0x212   :  { %v904_v27 = vpop.xlane.xlu1 %903 }
 0x213   :  { %3366 = vrcp.f32 %v904_v27 }
 0x21a   :  { %v907_v28 = vpop.xlane.xlu1 %906 }
 0x21b   :  { %3368 = vrcp.f32 %v907_v28 }
 0x21d   :  { %v3367_v29 = vpop.eup %3366 }
 0x21e   :  { %v910_v30 = vmul.f32 %v3367_v29, %v3363_v23 }
 0x220   :  { %3034 = vmatmul.mubr.msk.f32.vlgmr.msra.gmra.mrb[4].mxu1 %vm889_vm3, %v910_v30 }
 0x221   :  { %3180 = vmatpush3.bf16.msra.mxu1 %v3556_v10  ;;  %3040 = vmatprep.mubr.msk.f32.mxu1 %vm3435_vm2, %v3436_v5 }
 0x222   :  { %3182 = vmatprep.subr.bf16.mxu1 %v3181_v35 }
 0x225   :  { %v3369_v31 = vpop.eup %3368 }
 0x226   :  { %v911_v32 = vmul.f32 %v3369_v31, %v3365_v25 }
 0x228   :  { %3041 = vmatmul.mubr.msk.f32.vlgmr.msra.gmra.mrb[6].mxu1 %vm889_vm3, %v911_v32 }
 0x229   :  { %3184 = vmatpush3.bf16.msra.mxu1 %v3181_v35 }
 0x22a   :  { %3186 = vmatprep.subr.bf16.mxu1 %v3185_v38 }
 0x22d   :  { %3188 = vmatpush3.bf16.msra.mxu1 %v3185_v38 }
 0x22e   :  { %3190 = vmatprep.subr.bf16.mxu1 %v3597_v41 }
 0x2f3   :  { %v981_v42 = vpop.f32.mrb[4].mxu1 }
 0x2f4   :  { %v3035_v43 = vpop.f32.mrb[5].mxu1  ;;  %3051 = vmatprep.mubr.msk.f32.mxu1 %vm132_vm0, %v981_v42  ;;  %v121_v42 = vld [vmem:[%s4423_s5] sm:$0xff] }
 0x2f5   :  { %v122_v43 = vld [vmem:[%s4423_s5 + $0x8] sm:$0xff] }
 0x2fb   :  { %v1054_v44 = vpop.f32.mrb[6].mxu1 }
 0x2fc   :  { %v3042_v45 = vpop.f32.mrb[7].mxu1  ;;  %3052 = vmatmul.mubr.msk.f32.vlgmr.msra.gmra.mrb[8].mxu1 %vm132_vm0, %v1054_v44  ;;  %v123_v44 = vld [vmem:[%s4423_s5 + $0x10] sm:$0xff] }
 0x2fd   :  { %3192 = vmatpush3.bf16.msra.mxu1 %v3597_v41  ;;  %v3159_v45 = vpack.c.bf16 %v122_v43, %v121_v42  ;;  %v3163_v49 = vpack.c.bf16 %v124_v46, %v123_v44  ;;  %v92_v42 = vld [vmem:[%s4419_s1 + $0x118] sm:$0xff]  ;;  %v93_v43 = vld [vmem:[%s4419_s1 + $0x120] sm:$0xff]  ;;  %v94_v44 = vld [vmem:[%s4419_s1 + $0x128] sm:$0xff] }
 0x2fe   :  { %3194 = vmatprep.subr.bf16.mxu1 %v3609_v48  ;;  %v95_v46 = vld [vmem:[%s4419_s1 + $0x130] sm:$0xff] }
 0x2ff   :  { %3160 = vmatprep.subr.bf16.mxu0 %v3159_v45 }
 0x300   :  { %3162 = vmatpush3.bf16.msra.mxu0 %v3159_v45  ;;  %v3895_v45 = vld [vmem:[%s4424_s6] ss:$0 sm:$0xff] }
 0x301   :  { %3196 = vmatpush3.bf16.msra.mxu1 %v3609_v48  ;;  %3164 = vmatprep.subr.bf16.mxu0 %v3163_v49 }
 0x302   :  { %3198 = vmatprep.subr.bf16.mxu1 %v3619_v51 }
 0x304   :  { %3166 = vmatpush3.bf16.msra.mxu0 %v3163_v49 }
 0x307   :  { %2920 = vmatmul.mubr.msk.f32.vlgmr.msra.gmra.mrb[0].mxu0 %vm132_vm0, %v58_v50 }
 0x3cf   :  { %v3053_v53 = vpop.f32.mrb[8].mxu1 }
 0x3d0   :  { %v1147_v54 = vadd.f32 %v3053_v53, %v2599_v52  ;;  %v1141_v55 = vpop.f32.mrb[9].mxu1  ;;  %v60_v53 = vld [vmem:[%s4419_s1 + $0x18] sm:$0xff] }
 0x3d1   :  { %v1142_v56 = vadd.f32 %v2599_v52, %v1141_v55  ;;  %v59_v52 = vld [vmem:[%s4419_s1 + $0x10] sm:$0xff]  ;;  %v62_v55 = vld [vmem:[%s4419_s1 + $0x28] sm:$0xff] }
 0x3d2   :  { %v1151_v58 = vmax.f32 %v1147_v54, 0.0  ;;  %2922 = vmatprep.mubr.msk.f32.mxu0 %vm132_vm0, %v59_v52  ;;  %v61_v54 = vld [vmem:[%s4419_s1 + $0x20] sm:$0xff]  ;;  %v96_v52 = vld [vmem:[%s4419_s1 + $0x138] sm:$0xff] }
 0x3d3   :  { %v1150_v57 = vmax.f32 %v1142_v56, 0.0  ;;  %2923 = vmatmul.mubr.msk.f32.gmra.mrb[2].mxu0 %vm132_vm0, %v60_v53  ;;  %v63_v56 = vld [vmem:[%s4419_s1 + $0x30] sm:$0xff] }
 0x3d4   :  { %v1442_v24 = vmul.f32 0.17677669, %v1151_v58  ;;  %2925 = vmatprep.mubr.msk.f32.mxu0 %vm132_vm0, %v61_v54  ;;  %v97_v54 = vld [vmem:[%s4419_s1 + $0x140] sm:$0xff] }
 0x3d5   :  { %3062 = vmatprep.mubr.msk.f32.mxu1 %vm132_vm0, %v1150_v57  ;;  %v1441_v23 = vmul.f32 0.17677669, %v1150_v57  ;;  %v64_v57 = vld [vmem:[%s4419_s1 + $0x38] sm:$0xff] }
 0x3d6   :  { %3063 = vmatmul.mubr.msk.f32.vlgmr.msra.gmra.mrb[10].mxu1 %vm132_vm0, %v1151_v58  ;;  %v65_v58 = vld [vmem:[%s4419_s1 + $0x40] sm:$0xff] }
 0x3d7   :  { %3200 = vmatpush3.bf16.msra.mxu1 %v3619_v51  ;;  %2926 = vmatmul.mubr.msk.f32.gmra.mrb[4].mxu0 %vm132_vm0, %v62_v55 }
 0x3d8   :  { %3202 = vmatprep.subr.bf16.mxu1 %v3634_v61  ;;  %2928 = vmatprep.mubr.msk.f32.mxu0 %vm132_vm0, %v63_v56 }
 0x3da   :  { %v2921_v47 = vpop.f32.mrb[0].mxu0 }
 0x3db   :  { %3204 = vmatpush3.bf16.msra.mxu1 %v3634_v61  ;;  %2929 = vmatmul.mubr.msk.f32.gmra.mrb[6].mxu0 %vm132_vm0, %v64_v57  ;;  %v3902_v49 = vadd.f32 %v2921_v47, %v3895_v45  ;;  %v391_v50 = vpop.f32.mrb[1].mxu0  ;;  %v110_v47 = vld [vmem:[%s4419_s1 + $0x1a8] sm:$0xff] }
 0x3dc   :  { %3206 = vmatprep.subr.bf16.mxu1 %v3644_v0  ;;  %2931 = vmatprep.mubr.msk.f32.mxu0 %vm132_vm0, %v65_v58  ;;  %v3909_v53 = vadd.f32 %v3895_v45, %v391_v50 }
 0x3de   :  { %v3262_v55 = vpack.c.bf16 %v3902_v49, %v3909_v53 }
 0x3df   :  { %2932 = vmatmul.mubr.msk.f32.gmra.mrb[8].mxu0 %vm132_vm0, %v66_v59  ;;  %v98_v59 = vld [vmem:[%s4419_s1 + $0x148] sm:$0xff] }
 0x3e0   :  { %2934 = vmatprep.mubr.msk.f32.mxu0 %vm132_vm0, %v67_v60 }
 0x3e3   :  { %2935 = vmatmul.mubr.msk.f32.gmra.mrb[10].mxu0 %vm132_vm0, %v68_v62  ;;  %v99_v62 = vld [vmem:[%s4419_s1 + $0x150] sm:$0xff] }
 0x3e4   :  { %2937 = vmatprep.mubr.msk.f32.mxu0 %vm132_vm0, %v69_v63 }
 0x4a6   :  { %v2924_v56 = vpop.f32.mrb[2].mxu0 }
 0x4a7   :  { %v3918_v57 = vadd.f32 %v2924_v56, %v3895_v45  ;;  %v401_v58 = vpop.f32.mrb[3].mxu0 }
 0x4a8   :  { %v3925_v60 = vadd.f32 %v3895_v45, %v401_v58 }
 0x4a9   :  { %v3064_v6 = vpop.f32.mrb[10].mxu1 }
 0x4aa   :  { %v1236_v7 = vadd.f32 %v3064_v6, %v3650_v1  ;;  %v1230_v8 = vpop.f32.mrb[11].mxu1  ;;  %v70_v6 = vld [vmem:[%s4419_s1 + $0x68] sm:$0xff]  ;;  %v3268_v63 = vpack.c.bf16 %v3918_v57, %v3925_v60 }
 0x4ab   :  { %v1231_v9 = vadd.f32 %v3650_v1, %v1230_v8  ;;  %2938 = vmatmul.mubr.msk.f32.gmra.mrb[12].mxu0 %vm132_vm0, %v70_v6  ;;  %v72_v8 = vld [vmem:[%s4419_s1 + $0x78] sm:$0xff]  ;;  %v2927_v6 = vpop.f32.mrb[4].mxu0 }
 0x4ac   :  { %v1240_v14 = vmax.f32 %v1236_v7, 0.0  ;;  %v71_v7 = vld [vmem:[%s4419_s1 + $0x70] sm:$0xff] }
 0x4ad   :  { %v1239_v13 = vmax.f32 %v1231_v9, 0.0  ;;  %2940 = vmatprep.mubr.msk.f32.mxu0 %vm132_vm0, %v71_v7  ;;  %v73_v9 = vld [vmem:[%s4419_s1 + $0x80] sm:$0xff]  ;;  %v3934_v7 = vadd.f32 %v2927_v6, %v3895_v45 }
 0x4af   :  { %3073 = vmatprep.mubr.msk.f32.mxu1 %vm132_vm0, %v1239_v13  ;;  %2941 = vmatmul.mubr.msk.f32.gmra.mrb[14].mxu0 %vm132_vm0, %v72_v8  ;;  %v76_v13 = vld [vmem:[%s4419_s1 + $0x98] sm:$0xff]  ;;  %v411_v8 = vpop.f32.mrb[5].mxu0 }
 0x4b0   :  { %3074 = vmatmul.mubr.msk.f32.vlgmr.msra.gmra.mrb[12].mxu1 %vm132_vm0, %v1240_v14  ;;  %2943 = vmatprep.mubr.msk.f32.mxu0 %vm132_vm0, %v73_v9  ;;  %v77_v14 = vld [vmem:[%s4419_s1 + $0xa0] sm:$0xff]  ;;  %v100_v9 = vld [vmem:[%s4419_s1 + $0x158] sm:$0xff] }
 0x4b1   :  { %3208 = vmatpush3.bf16.msra.mxu1 %v3644_v0 }
 0x4b2   :  { %3210 = vmatprep.subr.bf16.mxu1 %v3660_v15 }
 0x4b3   :  { %2944 = vmatmul.mubr.msk.f32.gmra.mrb[16].mxu0 %vm132_vm0, %v74_v11  ;;  %v3941_v11 = vadd.f32 %v3895_v45, %v411_v8  ;;  %v113_v8 = vld [vmem:[%s4419_s1 + $0x1c0] sm:$0xff] }
 0x4b4   :  { %2946 = vmatprep.mubr.msk.f32.mxu0 %vm132_vm0, %v75_v12  ;;  %v101_v12 = vld [vmem:[%s4419_s1 + $0x160] sm:$0xff] }
 0x4b5   :  { %3212 = vmatpush3.bf16.msra.mxu1 %v3660_v15 }
 0x4b6   :  { %3213 = vmatprep.subr.bf16.mxu1 %v3434_v2 }
 0x4b7   :  { %2947 = vmatmul.mubr.msk.f32.gmra.mrb[18].mxu0 %vm132_vm0, %v76_v13  ;;  %v3274_v13 = vpack.c.bf16 %v3934_v7, %v3941_v11  ;;  %v115_v7 = vld [vmem:[%s4419_s1 + $0x1d0] sm:$0xff]  ;;  %v116_v11 = vld [vmem:[%s4419_s1 + $0x1d8] sm:$0xff] }
 0x4b8   :  { %2949 = vmatprep.mubr.msk.f32.mxu0 %vm132_vm0, %v77_v14  ;;  %v2930_v14 = vpop.f32.mrb[6].mxu0 }
 0x583   :  { %v3075_v17 = vpop.f32.mrb[12].mxu1 }
 0x584   :  { %v1325_v18 = vadd.f32 %v3075_v17, %v3671_v16  ;;  %v1319_v19 = vpop.f32.mrb[13].mxu1  ;;  %v78_v17 = vld [vmem:[%s4419_s1 + $0xa8] sm:$0xff] }
 0x585   :  { %v1320_v20 = vadd.f32 %v3671_v16, %v1319_v19  ;;  %2950 = vmatmul.mubr.msk.f32.gmra.mrb[20].mxu0 %vm132_vm0, %v78_v17  ;;  %v80_v19 = vld [vmem:[%s4419_s1 + $0xb8] sm:$0xff]  ;;  %v3950_v17 = vadd.f32 %v2930_v14, %v3895_v45 }
 0x586   :  { %v1329_v22 = vmax.f32 %v1325_v18, 0.0  ;;  %v79_v18 = vld [vmem:[%s4419_s1 + $0xb0] sm:$0xff] }
 0x587   :  { %v1328_v21 = vmax.f32 %v1320_v20, 0.0  ;;  %2952 = vmatprep.mubr.msk.f32.mxu0 %vm132_vm0, %v79_v18  ;;  %v81_v20 = vld [vmem:[%s4419_s1 + $0xc0] sm:$0xff]  ;;  %v421_v18 = vpop.f32.mrb[7].mxu0 }
 0x589   :  { %3084 = vmatprep.mubr.msk.f32.mxu1 %vm132_vm0, %v1328_v21  ;;  %2953 = vmatmul.mubr.msk.f32.gmra.mrb[22].mxu0 %vm132_vm0, %v80_v19  ;;  %v82_v21 = vld [vmem:[%s4419_s1 + $0xc8] sm:$0xff] }
 0x58a   :  { %3085 = vmatmul.mubr.msk.f32.vlgmr.msra.gmra.mrb[14].mxu1 %vm132_vm0, %v1329_v22  ;;  %2955 = vmatprep.mubr.msk.f32.mxu0 %vm132_vm0, %v81_v20  ;;  %v83_v22 = vld [vmem:[%s4419_s1 + $0xd0] sm:$0xff]  ;;  %v102_v19 = vld [vmem:[%s4419_s1 + $0x168] sm:$0xff]  ;;  %v3957_v20 = vadd.f32 %v3895_v45, %v421_v18 }
 0x58b   :  { %3216 = vmatpush3.bf16.xpose.msk.msra.mxu1 %vm3537_vm1, %v3533_v3  ;;  %3091 = vmatprep.mubr.msk.f32.mxu1 %vm3435_vm2, %v3436_v5 }
 0x58c   :  { %3217 = vmatprep.subr.bf16.mxu1 %v3434_v2 }
 0x58d   :  { %2956 = vmatmul.mubr.msk.f32.gmra.mrb[24].mxu0 %vm132_vm0, %v82_v21  ;;  %v103_v21 = vld [vmem:[%s4419_s1 + $0x170] sm:$0xff] }
 0x58e   :  { %2958 = vmatprep.mubr.msk.f32.mxu0 %vm132_vm0, %v83_v22  ;;  %v3280_v22 = vpack.c.bf16 %v3950_v17, %v3957_v20  ;;  %v118_v17 = vld [vmem:[%s4419_s1 + $0x1e8] sm:$0xff] }
 0x592   :  { %3092 = vmatmul.mubr.msk.f32.vlgmr.msra.gmra.mrb[16].mxu1 %vm132_vm0, %v1441_v23  ;;  %v84_v23 = vld [vmem:[%s4419_s1 + $0xd8] sm:$0xff] }
 0x593   :  { %3220 = vmatpush3.bf16.xpose.msk.msra.mxu1 %vm3537_vm1, %v3556_v10  ;;  %3098 = vmatprep.mubr.msk.f32.mxu1 %vm3435_vm2, %v3436_v5 }
 0x594   :  { %3221 = vmatprep.subr.bf16.mxu1 %v3434_v2  ;;  %2959 = vmatmul.mubr.msk.f32.gmra.mrb[26].mxu0 %vm132_vm0, %v84_v23  ;;  %v2933_v23 = vpop.f32.mrb[8].mxu0 }
 0x59a   :  { %3099 = vmatmul.mubr.msk.f32.vlgmr.msra.gmra.mrb[18].mxu1 %vm132_vm0, %v1442_v24  ;;  %v85_v24 = vld [vmem:[%s4419_s1 + $0xe0] sm:$0xff] }
 0x59b   :  { %3223 = vmatpush3.bf16.msra.mxu1 %v3533_v3  ;;  %3105 = vmatprep.mubr.msk.f32.mxu1 %vm3435_vm2, %v3436_v5 }
 0x59c   :  { %3224 = vmatprep.subr.bf16.mxu1 %v3434_v2  ;;  %2961 = vmatprep.mubr.msk.f32.mxu0 %vm132_vm0, %v85_v24  ;;  %v3966_v24 = vadd.f32 %v2933_v23, %v3895_v45 }
 0x65d   :  { %v3695_v25 = vpop.f32.mrb[14].mxu1 }
 0x65e   :  { %v3697_v26 = vpop.f32.mrb[15].mxu1 }
 0x665   :  { %v1512_v27 = vpop.f32.mrb[16].mxu1 }
 0x666   :  { %v3093_v28 = vpop.f32.mrb[17].mxu1  ;;  %v1589_v29 = vsel %vm889_vm3, %v1512_v27, -inf }
 0x667   :  { %1590 = vmax.xlane.f32.xlu0 %v1589_v29 }
 0x66d   :  { %v1585_v30 = vpop.f32.mrb[18].mxu1 }
 0x66e   :  { %v3100_v31 = vpop.f32.mrb[19].mxu1  ;;  %v1592_v32 = vsel %vm889_vm3, %v1585_v30, -inf }
 0x66f   :  { %1593 = vmax.xlane.f32.xlu1 %v1592_v32 }
 0x6f4   :  { %v1591_v3 = vpop.xlane.xlu0 %1590 }
 0x6f5   :  { %v1595_v33 = vsub.f32 %v1512_v27, %v1591_v3  ;;  %v86_v27 = vld [vmem:[%s4419_s1 + $0xe8] sm:$0xff] }
 0x6f6   :  { %2962 = vmatmul.mubr.msk.f32.gmra.mrb[28].mxu0 %vm132_vm0, %v86_v27  ;;  %v431_v27 = vpop.f32.mrb[9].mxu0 }
 0x6f7   :  { %v1597_v34 = vmul.f32 1.442695, %v1595_v33  ;;  %v2621_v33 = vld [vmem:[%s4425_s7 + $0x20] sm:$0xff] }
 0x6f9   :  { %3370 = vpow2.f32 %v1597_v34  ;;  %v2622_v34 = vld [vmem:[%s4425_s7 + $0x28] sm:$0xff] }
 0x6fc   :  { %v1594_v35 = vpop.xlane.xlu1 %1593 }
 0x6fd   :  { %v1596_v2 = vsub.f32 %v1585_v30, %v1594_v35  ;;  %v3227_v35 = vpack.c.bf16 %v2622_v34, %v2621_v33  ;;  %v106_v34 = vld [vmem:[%s4419_s1 + $0x188] sm:$0xff] }
 0x6ff   :  { %v1599_v36 = vmul.f32 1.442695, %v1596_v2  ;;  %v2623_v2 = vld [vmem:[%s4425_s7 + $0x30] sm:$0xff] }
 0x701   :  { %3372 = vpow2.f32 %v1599_v36  ;;  %v2624_v36 = vld [vmem:[%s4425_s7 + $0x38] sm:$0xff]  ;;  %s2510_s7 = sshll.u32 %s3438_s3, 4  ;;  %s2511_s7 = int_to_ptr.vmem [resolvable:$true] %s2510_s7 }
 0x702   :  { %p3415_p1 = scmp.lt.s32.totalorder %s2511_s7, %s2511_s7 }
 0x703   :  { %v3701_v37 = vpop.eup %3370 }
 0x704   :  { %v1601_v38 = vsel %vm889_vm3, %v3701_v37, 0.0 }
 0x705   :  { %1602 = vadd.xlane.f32.xlu0 %v1601_v38  ;;  %v89_v38 = vld [vmem:[%s4419_s1 + $0x100] sm:$0xff] }
 0x70b   :  { %v3705_v39 = vpop.eup %3372 }
 0x70c   :  { %v1604_v40 = vsel %vm889_vm3, %v3705_v39, 0.0 }
 0x70d   :  { %1605 = vadd.xlane.f32.xlu1 %v1604_v40  ;;  %v91_v40 = vld [vmem:[%s4419_s1 + $0x110] sm:$0xff] }
 0x792   :  { %v1603_v28 = vpop.xlane.xlu0 %1602 }
 0x793   :  { %3374 = vrcp.f32 %v1603_v28  ;;  %v104_v28 = vld [vmem:[%s4419_s1 + $0x178] sm:$0xff] }
 0x79a   :  { %v1606_v29 = vpop.xlane.xlu1 %1605 }
 0x79b   :  { %3376 = vrcp.f32 %v1606_v29  ;;  %v3973_v29 = vadd.f32 %v3895_v45, %v431_v27 }
 0x79d   :  { %v3375_v30 = vpop.eup %3374 }
 0x79e   :  { %v1609_v31 = vmul.f32 %v3375_v30, %v3701_v37  ;;  %v3231_v37 = vpack.c.bf16 %v2624_v36, %v2623_v2  ;;  %v105_v30 = vld [vmem:[%s4419_s1 + $0x180] sm:$0xff] }
 0x7a0   :  { %3106 = vmatmul.mubr.msk.f32.vlgmr.msra.gmra.mrb[20].mxu1 %vm889_vm3, %v1609_v31  ;;  %v3286_v31 = vpack.c.bf16 %v3966_v24, %v3973_v29 }
 0x7a1   :  { %3226 = vmatpush3.bf16.msra.mxu1 %v3556_v10  ;;  %3112 = vmatprep.mubr.msk.f32.mxu1 %vm3435_vm2, %v3436_v5  ;;  %v87_v10 = vld [vmem:[%s4419_s1 + $0xf0] sm:$0xff]  ;;  %v88_v5 = vld [vmem:[%s4419_s1 + $0xf8] sm:$0xff] }
 0x7a2   :  { %2964 = vmatprep.mubr.msk.f32.mxu0 %vm132_vm0, %v87_v10  ;;  %3228 = vmatprep.subr.bf16.mxu1 %v3227_v35  ;;  %v107_v10 = vld [vmem:[%s4419_s1 + $0x190] sm:$0xff] }
 0x7a3   :  { %2965 = vmatmul.mubr.msk.f32.gmra.mrb[30].mxu0 %vm132_vm0, %v88_v5 }
 0x7a4   :  { %2967 = vmatprep.mubr.msk.f32.mxu0 %vm132_vm0, %v89_v38  ;;  %v108_v38 = vld [vmem:[%s4419_s1 + $0x198] sm:$0xff] }
 0x7a5   :  { %v3377_v32 = vpop.eup %3376 }
 0x7a6   :  { %v1610_v3 = vmul.f32 %v3377_v32, %v3705_v39  ;;  %v90_v39 = vld [vmem:[%s4419_s1 + $0x108] sm:$0xff]  ;;  %v2936_v32 = vpop.f32.mrb[10].mxu0 }
 0x7a7   :  { %2968 = vmatmul.mubr.msk.f32.gmra.mrb[32].mxu0 %vm132_vm0, %v90_v39  ;;  %v441_v33 = vpop.f32.mrb[11].mxu0 }
 0x7a8   :  { %3113 = vmatmul.mubr.msk.f32.vlgmr.msra.gmra.mrb[22].mxu1 %vm889_vm3, %v1610_v3  ;;  %2970 = vmatprep.mubr.msk.f32.mxu0 %vm132_vm0, %v91_v40  ;;  %v3982_v3 = vadd.f32 %v2936_v32, %v3895_v45  ;;  %v2939_v2 = vpop.f32.mrb[12].mxu0  ;;  %v109_v40 = vld [vmem:[%s4419_s1 + $0x1a0] sm:$0xff] }
 0x7a9   :  { %3230 = vmatpush3.bf16.msra.mxu1 %v3227_v35  ;;  %v3989_v35 = vadd.f32 %v3895_v45, %v441_v33  ;;  %v3998_v36 = vadd.f32 %v2939_v2, %v3895_v45 }
 0x7aa   :  { %3232 = vmatprep.subr.bf16.mxu1 %v3231_v37 }
 0x7ab   :  { %2971 = vmatmul.mubr.msk.f32.gmra.mrb[34].mxu0 %vm132_vm0, %v92_v42  ;;  %v3292_v5 = vpack.c.bf16 %v3982_v3, %v3989_v35 }
 0x7ac   :  { %2973 = vmatprep.mubr.msk.f32.mxu0 %vm132_vm0, %v93_v43 }
 0x7ad   :  { %3234 = vmatpush3.bf16.msra.mxu1 %v3231_v37  ;;  %v451_v37 = vpop.f32.mrb[13].mxu0 }
 0x7ae   :  { %3236 = vmatprep.subr.bf16.mxu1 %v3597_v41  ;;  %v4005_v39 = vadd.f32 %v3895_v45, %v451_v37  ;;  %v2942_v43 = vpop.f32.mrb[14].mxu0 }
 0x7af   :  { %2974 = vmatmul.mubr.msk.f32.gmra.mrb[36].mxu0 %vm132_vm0, %v94_v44  ;;  %v4014_v44 = vadd.f32 %v2942_v43, %v3895_v45 }
 0x7b0   :  { %2976 = vmatprep.mubr.msk.f32.mxu0 %vm132_vm0, %v95_v46  ;;  %v3298_v42 = vpack.c.bf16 %v3998_v36, %v4005_v39  ;;  %v461_v46 = vpop.f32.mrb[15].mxu0 }
 0x7b1   :  { %v4021_v50 = vadd.f32 %v3895_v45, %v461_v46  ;;  %v2945_v56 = vpop.f32.mrb[16].mxu0 }
 0x7b2   :  { %v477_v58 = vadd.f32 %v2945_v56, %v3895_v45 }
 0x7b3   :  { %2977 = vmatmul.mubr.msk.f32.gmra.mrb[38].mxu0 %vm132_vm0, %v96_v52  ;;  %v111_v52 = vld [vmem:[%s4419_s1 + $0x1b0] sm:$0xff] }
 0x7b4   :  { %2979 = vmatprep.mubr.msk.f32.mxu0 %vm132_vm0, %v97_v54  ;;  %v3304_v54 = vpack.c.bf16 %v4014_v44, %v4021_v50 }
 0x7b7   :  { %2980 = vmatmul.mubr.msk.f32.gmra.mrb[40].mxu0 %vm132_vm0, %v98_v59  ;;  %v471_v59 = vpop.f32.mrb[17].mxu0 }
 0x7b8   :  { %2982 = vmatprep.mubr.msk.f32.mxu0 %vm132_vm0, %v99_v62  ;;  %v112_v62 = vld [vmem:[%s4419_s1 + $0x1b8] sm:$0xff]  ;;  %v472_v6 = vadd.f32 %v3895_v45, %v471_v59 }
 0x7bb   :  { %2983 = vmatmul.mubr.msk.f32.gmra.mrb[42].mxu0 %vm132_vm0, %v100_v9  ;;  %v3259_v9 = vpack.c.bf16 %v477_v58, %v472_v6 }
 0x7bc   :  { %2985 = vmatprep.mubr.msk.f32.mxu0 %vm132_vm0, %v101_v12  ;;  %v2948_v12 = vpop.f32.mrb[18].mxu0 }
 0x7bd   :  { %v487_v14 = vadd.f32 %v2948_v12, %v3895_v45  ;;  %v481_v18 = vpop.f32.mrb[19].mxu0  ;;  %3261 = vmatprep.subr.msk.bf16.mxu0 %vm3537_vm1, %v3259_v9 }
 0x7be   :  { %3264 = vmatpush3.bf16.xpose.msk.msra.mxu0 %vm3537_vm1, %v3262_v55  ;;  %v2951_v27 = vpop.f32.mrb[20].mxu0 }
 0x7bf   :  { %2986 = vmatmul.mubr.msk.f32.gmra.mrb[44].mxu0 %vm132_vm0, %v102_v19  ;;  %v114_v19 = vld [vmem:[%s4419_s1 + $0x1c8] sm:$0xff] }
 0x7c0   :  { %2988 = vmatprep.mubr.msk.f32.mxu0 %vm132_vm0, %v103_v21  ;;  %v482_v21 = vadd.f32 %v3895_v45, %v481_v18 }
 0x7c2   :  { %v3265_v23 = vpack.c.bf16 %v487_v14, %v482_v21 }
 0x7c3   :  { %2989 = vmatmul.mubr.msk.f32.gmra.mrb[46].mxu0 %vm132_vm0, %v104_v28  ;;  %v497_v28 = vadd.f32 %v2951_v27, %v3895_v45 }
 0x7c4   :  { %2991 = vmatprep.mubr.msk.f32.mxu0 %vm132_vm0, %v105_v30  ;;  %v491_v30 = vpop.f32.mrb[21].mxu0  ;;  %3267 = vmatprep.subr.msk.bf16.mxu0 %vm3537_vm1, %v3265_v23 }
 0x7c5   :  { %v492_v32 = vadd.f32 %v3895_v45, %v491_v30 }
 0x7c6   :  { %3270 = vmatpush3.bf16.xpose.msk.msra.mxu0 %vm3537_vm1, %v3268_v63 }
 0x7c7   :  { %2992 = vmatmul.mubr.msk.f32.gmra.mrb[48].mxu0 %vm132_vm0, %v106_v34  ;;  %v3271_v33 = vpack.c.bf16 %v497_v28, %v492_v32  ;;  %v2954_v34 = vpop.f32.mrb[22].mxu0 }
 0x7c8   :  { %2994 = vmatprep.mubr.msk.f32.mxu0 %vm132_vm0, %v107_v10  ;;  %v507_v10 = vadd.f32 %v2954_v34, %v3895_v45  ;;  %v501_v49 = vpop.f32.mrb[23].mxu0 }
 0x7c9   :  { %v502_v53 = vadd.f32 %v3895_v45, %v501_v49  ;;  %3273 = vmatprep.subr.msk.bf16.mxu0 %vm3537_vm1, %v3271_v33  ;;  %v2957_v2 = vpop.f32.mrb[24].mxu0 }
 0x7ca   :  { %v517_v37 = vadd.f32 %v2957_v2, %v3895_v45 }
 0x7cb   :  { %2995 = vmatmul.mubr.msk.f32.gmra.mrb[50].mxu0 %vm132_vm0, %v108_v38  ;;  %v3277_v55 = vpack.c.bf16 %v507_v10, %v502_v53  ;;  %v511_v38 = vpop.f32.mrb[25].mxu0 }
 0x7cc   :  { %2997 = vmatprep.mubr.msk.f32.mxu0 %vm132_vm0, %v109_v40  ;;  %v512_v40 = vadd.f32 %v3895_v45, %v511_v38  ;;  %v2960_v46 = vpop.f32.mrb[26].mxu0 }
 0x7ce   :  { %v3283_v43 = vpack.c.bf16 %v517_v37, %v512_v40  ;;  %3276 = vmatpush3.bf16.xpose.msk.msra.mxu0 %vm3537_vm1, %v3274_v13  ;;  %v117_v13 = vld [vmem:[%s4419_s1 + $0x1e0] sm:$0xff] }
 0x7cf   :  { %2998 = vmatmul.mubr.msk.f32.gmra.mrb[52].mxu0 %vm132_vm0, %v110_v47  ;;  %v527_v47 = vadd.f32 %v2960_v46, %v3895_v45  ;;  %3279 = vmatprep.subr.msk.bf16.mxu0 %vm3537_vm1, %v3277_v55 }
 0x7d0   :  { %3000 = vmatprep.mubr.msk.f32.mxu0 %vm132_vm0, %v111_v52  ;;  %v521_v52 = vpop.f32.mrb[27].mxu0 }
 0x7d1   :  { %v522_v57 = vadd.f32 %v3895_v45, %v521_v52  ;;  %v2963_v63 = vpop.f32.mrb[28].mxu0 }
 0x7d2   :  { %v537_v56 = vadd.f32 %v2963_v63, %v3895_v45  ;;  %v531_v58 = vpop.f32.mrb[29].mxu0 }
 0x7d3   :  { %3001 = vmatmul.mubr.msk.f32.gmra.mrb[54].mxu0 %vm132_vm0, %v112_v62  ;;  %v3289_v60 = vpack.c.bf16 %v527_v47, %v522_v57  ;;  %v532_v59 = vadd.f32 %v3895_v45, %v531_v58 }
 0x7d4   :  { %3003 = vmatprep.mubr.msk.f32.mxu0 %vm132_vm0, %v113_v8 }
 0x7d5   :  { %v3295_v62 = vpack.c.bf16 %v537_v56, %v532_v59 }
 0x7d6   :  { %3282 = vmatpush3.bf16.xpose.msk.msra.mxu0 %vm3537_vm1, %v3280_v22 }
 0x7d7   :  { %3004 = vmatmul.mubr.msk.f32.gmra.mrb[56].mxu0 %vm132_vm0, %v114_v19  ;;  %3285 = vmatprep.subr.msk.bf16.mxu0 %vm3537_vm1, %v3283_v43 }
 0x7d8   :  { %3006 = vmatprep.mubr.msk.f32.mxu0 %vm132_vm0, %v115_v7 }
 0x7db   :  { %3007 = vmatmul.mubr.msk.f32.gmra.mrb[58].mxu0 %vm132_vm0, %v116_v11 }
 0x7dc   :  { %3009 = vmatprep.mubr.msk.f32.mxu0 %vm132_vm0, %v117_v13 }
 0x7de   :  { %3288 = vmatpush3.bf16.xpose.msk.msra.mxu0 %vm3537_vm1, %v3286_v31 }
 0x7df   :  { %3291 = vmatprep.subr.msk.bf16.mxu0 %vm3537_vm1, %v3289_v60  ;;  %3010 = vmatmul.mubr.msk.f32.gmra.mrb[60].mxu0 %vm132_vm0, %v118_v17 }
 0x7e6   :  { %3294 = vmatpush3.bf16.xpose.msk.msra.mxu0 %vm3537_vm1, %v3292_v5 }
 0x7e7   :  { %3297 = vmatprep.subr.msk.bf16.mxu0 %vm3537_vm1, %v3295_v62 }
 0x7ee   :  { %3300 = vmatpush3.bf16.xpose.msk.msra.mxu0 %vm3537_vm1, %v3298_v42 }
 0x873   :  { %v1680_v20 = vpop.f32.mrb[20].mxu1 }
 0x874   :  { %v3107_v22 = vpop.f32.mrb[21].mxu1  ;;  %3123 = vmatprep.mubr.msk.f32.mxu1 %vm132_vm0, %v1680_v20 }
 0x876   :  { %v2966_v31 = vpop.f32.mrb[30].mxu0 }
 0x877   :  { %v547_v3 = vadd.f32 %v2966_v31, %v3895_v45  ;;  %v541_v35 = vpop.f32.mrb[31].mxu0 }
 0x878   :  { %v542_v5 = vadd.f32 %v3895_v45, %v541_v35 }
 0x87a   :  { %v3301_v36 = vpack.c.bf16 %v547_v3, %v542_v5  ;;  %v2969_v39 = vpop.f32.mrb[32].mxu0 }
 0x87b   :  { %v1753_v24 = vpop.f32.mrb[22].mxu1  ;;  %v4145_v42 = vadd.f32 %v2969_v39, %v3895_v45  ;;  %v551_v44 = vpop.f32.mrb[33].mxu0 }
 0x87c   :  { %v3114_v29 = vpop.f32.mrb[23].mxu1  ;;  %3124 = vmatmul.mubr.msk.f32.vlgmr.msra.gmra.mrb[24].mxu1 %vm132_vm0, %v1753_v24  ;;  %3303 = vmatprep.subr.msk.bf16.mxu0 %vm3537_vm1, %v3301_v36  ;;  %v4148_v50 = vadd.f32 %v3895_v45, %v551_v44 }
 0x87d   :  { %3238 = vmatpush3.bf16.msra.mxu1 %v3597_v41  ;;  %3306 = vmatpush3.bf16.xpose.msk.msra.mxu0 %vm3537_vm1, %v3304_v54  ;;  %v119_v41 = vld [vmem:[%s4419_s1 + $0x1f0] sm:$0xff] }
 0x87e   :  { %3240 = vmatprep.subr.bf16.mxu1 %v3609_v48  ;;  %3012 = vmatprep.mubr.msk.f32.mxu0 %vm132_vm0, %v119_v41  ;;  %v2972_v54 = vpop.f32.mrb[34].mxu0  ;;  %v3310_v9 = vpack.c.bf16 %v4145_v42, %v4148_v50 }
 0x87f   :  { %v4151_v6 = vadd.f32 %v2972_v54, %v3895_v45  ;;  %v561_v8 = vpop.f32.mrb[35].mxu0 }
 0x880   :  { %v4156_v12 = vadd.f32 %v3895_v45, %v561_v8 }
 0x881   :  { %3242 = vmatpush3.bf16.msra.mxu1 %v3609_v48  ;;  %v120_v48 = vld [vmem:[%s4419_s1 + $0x1f8] sm:$0xff] }
 0x882   :  { %3244 = vmatprep.subr.bf16.mxu1 %v3619_v51  ;;  %3013 = vmatmul.mubr.msk.f32.gmra.mrb[62].mxu0 %vm132_vm0, %v120_v48  ;;  %v2975_v14 = vpop.f32.mrb[36].mxu0  ;;  %v3316_v21 = vpack.c.bf16 %v4151_v6, %v4156_v12 }
 0x883   :  { %v4159_v18 = vadd.f32 %v2975_v14, %v3895_v45  ;;  %v571_v19 = vpop.f32.mrb[37].mxu0 }
 0x884   :  { %v4164_v23 = vadd.f32 %v3895_v45, %v571_v19 }
 0x886   :  { %v2978_v27 = vpop.f32.mrb[38].mxu0  ;;  %v3322_v28 = vpack.c.bf16 %v4159_v18, %v4164_v23 }
 0x887   :  { %v4169_v30 = vadd.f32 %v2978_v27, %v3895_v45  ;;  %v581_v32 = vpop.f32.mrb[39].mxu0 }
 0x888   :  { %v4172_v33 = vadd.f32 %v3895_v45, %v581_v32 }
 0x88a   :  { %v3328_v34 = vpack.c.bf16 %v4169_v30, %v4172_v33  ;;  %v2981_v10 = vpop.f32.mrb[40].mxu0 }
 0x88b   :  { %v4177_v49 = vadd.f32 %v2981_v10, %v3895_v45  ;;  %v591_v53 = vpop.f32.mrb[41].mxu0 }
 0x88c   :  { %v4180_v55 = vadd.f32 %v3895_v45, %v591_v53 }
 0x88e   :  { %v2984_v37 = vpop.f32.mrb[42].mxu0 }
 0x88f   :  { %v4185_v38 = vadd.f32 %v2984_v37, %v3895_v45  ;;  %v601_v40 = vpop.f32.mrb[43].mxu0 }
 0x890   :  { %v4188_v43 = vadd.f32 %v3895_v45, %v601_v40 }
 0x892   :  { %v2987_v47 = vpop.f32.mrb[44].mxu0 }
 0x893   :  { %v4193_v52 = vadd.f32 %v2987_v47, %v3895_v45  ;;  %v611_v57 = vpop.f32.mrb[45].mxu0 }
 0x894   :  { %v4196_v60 = vadd.f32 %v3895_v45, %v611_v57 }
 0x896   :  { %v2990_v56 = vpop.f32.mrb[46].mxu0  ;;  %v4445_v50 = vpack.c.bf16 %v4193_v52, %v4196_v60  ;;  %v2608_v52 = vld [vmem:[%s4432_s14] ss:$0 sm:$0xff] }
 0x897   :  { %v4201_v58 = vadd.f32 %v2990_v56, %v3895_v45  ;;  %v621_v59 = vpop.f32.mrb[47].mxu0  ;;  %v1414_v60 = vadd.f32 %v3695_v25, %v2608_v52 }
 0x898   :  { %v4204_v62 = vadd.f32 %v3895_v45, %v621_v59 }
 0x89a   :  { %v2993_v11 = vpop.f32.mrb[48].mxu0  ;;  %v4446_v6 = vpack.c.bf16 %v4201_v58, %v4204_v62  ;;  %v1409_v62 = vadd.f32 %v2608_v52, %v3697_v26 }
 0x89b   :  { %v4209_v13 = vadd.f32 %v2993_v11, %v3895_v45  ;;  %v631_v17 = vpop.f32.mrb[49].mxu0 }
 0x89c   :  { %v4212_v20 = vadd.f32 %v3895_v45, %v631_v17 }
 0x89e   :  { %v3307_v22 = vpack.c.bf16 %v4209_v13, %v4212_v20  ;;  %v2996_v24 = vpop.f32.mrb[50].mxu0 }
 0x89f   :  { %v4217_v29 = vadd.f32 %v2996_v24, %v3895_v45  ;;  %v641_v31 = vpop.f32.mrb[51].mxu0 }
 0x8a0   :  { %v4220_v3 = vadd.f32 %v3895_v45, %v641_v31 }
 0x8a2   :  { %v3313_v35 = vpack.c.bf16 %v4217_v29, %v4220_v3  ;;  %v2999_v5 = vpop.f32.mrb[52].mxu0 }
 0x8a3   :  { %v4225_v36 = vadd.f32 %v2999_v5, %v3895_v45  ;;  %v651_v41 = vpop.f32.mrb[53].mxu0 }
 0x8a4   :  { %v4228_v48 = vadd.f32 %v3895_v45, %v651_v41  ;;  %v2626_v41 = vld [vmem:[%s4426_s8 + $0x1] ss:$0 sm:$0xff] }
 0x8a6   :  { %v3319_v39 = vpack.c.bf16 %v4225_v36, %v4228_v48  ;;  %v3002_v44 = vpop.f32.mrb[54].mxu0 }
 0x8a7   :  { %v4233_v54 = vadd.f32 %v3002_v44, %v3895_v45  ;;  %v661_v8 = vpop.f32.mrb[55].mxu0 }
 0x8a8   :  { %v4236_v14 = vadd.f32 %v3895_v45, %v661_v8 }
 0x8aa   :  { %v3325_v19 = vpack.c.bf16 %v4233_v54, %v4236_v14  ;;  %v3005_v27 = vpop.f32.mrb[56].mxu0 }
 0x8ab   :  { %v4241_v32 = vadd.f32 %v3005_v27, %v3895_v45  ;;  %v671_v10 = vpop.f32.mrb[57].mxu0 }
 0x8ac   :  { %v4244_v53 = vadd.f32 %v3895_v45, %v671_v10 }
 0x8ae   :  { %v3331_v37 = vpack.c.bf16 %v4241_v32, %v4244_v53  ;;  %v3008_v40 = vpop.f32.mrb[58].mxu0 }
 0x8af   :  { %v4249_v47 = vadd.f32 %v3008_v40, %v3895_v45  ;;  %v681_v57 = vpop.f32.mrb[59].mxu0 }
 0x8b0   :  { %v4252_v56 = vadd.f32 %v3895_v45, %v681_v57 }
 0x8b2   :  { %v3011_v11 = vpop.f32.mrb[60].mxu0 }
 0x8b3   :  { %v4257_v17 = vadd.f32 %v3011_v11, %v3895_v45  ;;  %v691_v24 = vpop.f32.mrb[61].mxu0 }
 0x8b4   :  { %v4260_v31 = vadd.f32 %v3895_v45, %v691_v24 }
 0x8b6   :  { %v4444_v42 = vpack.c.bf16 %v4257_v17, %v4260_v31 }
 0x94f   :  { %v3125_v44 = vpop.f32.mrb[24].mxu1 }
 0x950   :  { %v1848_v8 = vadd.f32 %v3125_v44, %v2626_v41  ;;  %v1842_v27 = vpop.f32.mrb[25].mxu1 }
 0x951   :  { %v1843_v10 = vadd.f32 %v2626_v41, %v1842_v27  ;;  %v2477_v27 = vlaneseq }
 0x952   :  { %v4267_v57 = vmax.f32 %v1848_v8, 0.0 }
 0x953   :  { %v1851_v40 = vmax.f32 %v1843_v10, 0.0  ;;  %v2471_v10 = vld [vmem:[%s4420_s2] sm:$0x3] }
 0x954   :  { %vm2473_vm4 = vcmp.gt.f32.partialorder %v2471_v10, 0.5 }
 0x955   :  { %3134 = vmatprep.mubr.msk.f32.mxu1 %vm132_vm0, %v1851_v40  ;;  %2875 = vmatprep.mubr.msk.f32.mxu0 %vm132_vm0, %v1851_v40  ;;  %v3014_v11 = vpop.f32.mrb[62].mxu0 }
 0x956   :  { %3135 = vmatmul.mubr.msk.f32.vlgmr.msra.gmra.mrb[26].mxu1 %vm132_vm0, %v4267_v57  ;;  %2876 = vmatmul.mubr.msk.f32.vlgmr.msra.gmra.mrb[64].mxu0 %vm132_vm0, %v1851_v40  ;;  %v707_v24 = vadd.f32 %v3014_v11, %v3895_v45  ;;  %v701_v41 = vpop.f32.mrb[63].mxu0  ;;  %v4283_v40 = vshrl.u32 %v2477_v27, 7 }
 0x957   :  { %3246 = vmatpush3.bf16.msra.mxu1 %v3619_v51  ;;  %v702_v44 = vadd.f32 %v3895_v45, %v701_v41 }
 0x958   :  { %3248 = vmatprep.subr.bf16.mxu1 %v3634_v61  ;;  %v2479_v51 = vsub.s32 0, %v4283_v40  ;;  %v2483_v63 = vsub.s32 1, %v4283_v40 }
 0x959   :  { %v3349_v8 = vpack.c.bf16 %v707_v24, %v702_v44 }
 0x95b   :  { %3250 = vmatpush3.bf16.msra.mxu1 %v3634_v61  ;;  %v4436_v61 = vmov 0  }
 0x95c   :  { %3252 = vmatprep.subr.bf16.mxu1 %v3644_v0  ;;  %v2475_v7 = vsel %vm2473_vm4, 1, %v4436_v61 }
 0x95d   :  { %v2480_v11 = vrot.slane %v2475_v7, %v2479_v51  ;;  %v2484_v45 = vrot.slane %v2475_v7, %v2483_v63 }
 0x95f   :  { %vm2493_vm5 = vcmp.eq.s32.totalorder %v2480_v11, 1  ;;  %vm2494_vm6 = vcmp.eq.s32.totalorder %v2484_v45, 1 }
 0xa29   :  { %v3136_v24 = vpop.f32.mrb[26].mxu1  ;;  %v2299_v41 = vpop.f32.mrb[64].mxu0 }
 0xa2a   :  { %v1931_v44 = vadd.f32 %v3136_v24, %v3650_v1  ;;  %v2497_v27 = vsel %vm2493_vm5, %v2299_v41, -inf  ;;  %v1925_v10 = vpop.f32.mrb[27].mxu1  ;;  %v2301_v5 = vpop.f32.mrb[65].mxu0 }
 0xa2b   :  { %2501 = vst [vmem:[#allocation2] sm:$0xff] %v2497_v27  ;;  %v1926_v61 = vadd.f32 %v3650_v1, %v1925_v10  ;;  %v2498_v46 = vsel %vm2494_vm6, %v2301_v5, -inf }
 0xa2c   :  { %2502 = vst [vmem:[#allocation2 + $0x8] sm:$0xff] %v2498_v46  ;;  %v1935_v2 = vmax.f32 %v1931_v44, 0.0 }
 0xa2d   :  { %v1934_v59 = vmax.f32 %v1926_v61, 0.0 }
 0xa2f   :  { %3145 = vmatprep.mubr.msk.f32.mxu1 %vm132_vm0, %v1934_v59 }
 0xa30   :  { %3146 = vmatmul.mubr.msk.f32.vlgmr.msra.gmra.mrb[28].mxu1 %vm132_vm0, %v1935_v2 }
 0xa31   :  { %3254 = vmatpush3.bf16.msra.mxu1 %v3644_v0  ;;  %v4441_v0 = vpack.c.bf16 %v4177_v49, %v4180_v55 }
 0xa32   :  { %3256 = vmatprep.subr.bf16.mxu1 %v3660_v15 }
 0xa35   :  { %3258 = vmatpush3.bf16.msra.mxu1 %v3660_v15  ;;  %v4442_v15 = vpack.c.bf16 %v4249_v47, %v4252_v56 }
 0xa36   :  { %3309 = vmatprep.subr.msk.bf16.mxu1 %vm3537_vm1, %v3307_v22 }
 0xb03   :  { %v3147_v1 = vpop.f32.mrb[28].mxu1 }
 0xb04   :  { %v2014_v46 = vadd.f32 %v3147_v1, %v3671_v16  ;;  %v2008_v7 = vpop.f32.mrb[29].mxu1 }
 0xb05   :  { %v2009_v59 = vadd.f32 %v3671_v16, %v2008_v7  ;;  %v4443_v16 = vpack.c.bf16 %v4185_v38, %v4188_v43 }
 0xb06   :  { %v2018_v2 = vmax.f32 %v2014_v46, 0.0 }
 0xb07   :  { %v2017_v5 = vmax.f32 %v2009_v59, 0.0 }
 0xb09   :  { %3156 = vmatprep.mubr.msk.f32.mxu1 %vm132_vm0, %v2017_v5 }
 0xb0a   :  { %3157 = vmatmul.mubr.msk.f32.vlgmr.msra.gmra.mrb[30].mxu1 %vm132_vm0, %v2018_v2 }
 0xb0b   :  { %3312 = vmatpush3.bf16.xpose.msk.msra.mxu1 %vm3537_vm1, %v3310_v9  ;;  %2909 = vmatprep.mubr.msk.f32.mxu1 %vm132_vm0, %v4267_v57  ;;  %v711_v9 = vld [vmem:[%s4422_s4] sm:$0xff] }
 0xb0c   :  { %3315 = vmatprep.subr.msk.bf16.mxu1 %vm3537_vm1, %v3313_v35  ;;  %v2590_v12 = vmul.f32 -1.442695, %v711_v9 }
 0xb0e   :  { %3378 = vpow2.f32 %v2590_v12  ;;  %v2472_v12 = vld [vmem:[%s4420_s2 + $0x2] sm:$0x3]  ;;  %s3410_s2 = scalar_lea.vmem %s2511_s7, 512 }
 0xb0f   :  { %vm2474_vm8 = vcmp.gt.f32.partialorder %v2472_v12, 0.5  ;;  %p3411_p0 = scmp.ne.s32.totalorder %s2511_s7, %s3410_s2  ;;  %p3416_p2 = scmp.lt.s32.totalorder %s3410_s2, %s3410_s2 }
 0xb11   :  { %p3417_p3 = por %p3416_p2, %p3415_p1 }
 0xb13   :  { %3318 = vmatpush3.bf16.xpose.msk.msra.mxu1 %vm3537_vm1, %v3316_v21  ;;  %p3418_p4 = pnand %p3417_p3, %p3411_p0 }
 0xb14   :  { %3321 = vmatprep.subr.msk.bf16.mxu1 %vm3537_vm1, %v3319_v39 }
 0xb18   :  { %v3379_v18 = vpop.eup %3378 }
 0xb19   :  { %v715_v21 = vadd.f32 1.0, %v3379_v18  ;;  %v4447_v18 = vmov 0  }
 0xb1b   :  { %3324 = vmatpush3.bf16.xpose.msk.msra.mxu1 %vm3537_vm1, %v3322_v28  ;;  %3380 = vrcp.f32 %v715_v21  ;;  %v2476_v21 = vsel %vm2474_vm8, 1, %v4447_v18 }
 0xb1c   :  { %3327 = vmatprep.subr.msk.bf16.mxu1 %vm3537_vm1, %v3325_v19 }
 0xb23   :  { %3330 = vmatpush3.bf16.xpose.msk.msra.mxu1 %vm3537_vm1, %v3328_v34 }
 0xb24   :  { %3333 = vmatprep.subr.msk.bf16.mxu1 %vm3537_vm1, %v3331_v37 }
 0xb25   :  { %v3381_v23 = vpop.eup %3380 }
 0xb26   :  { %v1417_v28 = vmax.f32 %v3381_v23, 0.0  ;;  %v2488_v23 = vrot.slane %v2476_v21, %v2479_v51 }
 0xb28   :  { %v1418_v30 = vmin.f32 %v1417_v28, 1.0  ;;  %v2492_v28 = vrot.slane %v2476_v21, %v2483_v63  ;;  %vm2495_vm9 = vcmp.eq.s32.totalorder %v2488_v23, 1 }
 0xb2a   :  { %v1422_v33 = vsub.f32 1.0, %v1418_v30  ;;  %v1419_v34 = vmax.f32 %v1418_v30, 0.001  ;;  %vm2496_vm10 = vcmp.eq.s32.totalorder %v2492_v28, 1 }
 0xb2b   :  { %3336 = vmatpush3.bf16.xpose.msk.msra.mxu1 %vm3537_vm1, %v4441_v0 }
 0xb2c   :  { %3339 = vmatprep.subr.msk.bf16.mxu1 %vm3537_vm1, %v4442_v15  ;;  %v1423_v49 = vmax.f32 %v1422_v33, 0.001  ;;  %3382 = vlog2.f32 %v1419_v34 }
 0xb2e   :  { %3384 = vlog2.f32 %v1423_v49 }
 0xb33   :  { %3342 = vmatpush3.bf16.xpose.msk.msra.mxu1 %vm3537_vm1, %v4443_v16 }
 0xb34   :  { %3345 = vmatprep.subr.msk.bf16.mxu1 %vm3537_vm1, %v4444_v42 }
 0xb36   :  { %v3383_v4 = vpop.eup %3382 }
 0xb37   :  { %v1421_v38 = vmul.f32 0.6931472, %v3383_v4 }
 0xb38   :  { %v3385_v55 = vpop.eup %3384 }
 0xb39   :  { %v1425_v43 = vmul.f32 0.6931472, %v3385_v55 }
 0xb3b   :  { %3348 = vmatpush3.bf16.xpose.msk.msra.mxu1 %vm3537_vm1, %v4445_v50  ;;  %v1426_v58 = vsub.f32 %v1421_v38, %v1425_v43 }
 0xb3c   :  { %3351 = vmatprep.subr.msk.bf16.mxu1 %vm3537_vm1, %v3349_v8 }
 0xb3d   :  { %v1428_v13 = vadd.f32 %v1426_v58, %v1414_v60  ;;  %v1427_v20 = vadd.f32 %v1426_v58, %v1409_v62 }
 0xb3f   :  { %v2612_v22 = vmul.f32 -1.442695, %v1428_v13  ;;  %v2611_v29 = vmul.f32 -1.442695, %v1427_v20 }
 0xb41   :  { %3386 = vpow2.f32 %v2612_v22 }
 0xb42   :  { %3388 = vpow2.f32 %v2611_v29 }
 0xb43   :  { %3354 = vmatpush3.bf16.xpose.msk.msra.mxu1 %vm3537_vm1, %v4446_v6 }
 0xb4a   :  { %2910 = vmatmul.mubr.msk.f32.vlgmr.msra.gmra.mrb[32].mxu1 %vm132_vm0, %v4267_v57 }
 0xb4b   :  { %v3387_v3 = vpop.eup %3386 }
 0xb4c   :  { %v3389_v35 = vpop.eup %3388  ;;  %v1436_v36 = vadd.f32 1.0, %v3387_v3 }
 0xb4d   :  { %v1435_v48 = vadd.f32 1.0, %v3389_v35 }
 0xb4e   :  { %3390 = vrcp.f32 %v1436_v36 }
 0xb4f   :  { %3392 = vrcp.f32 %v1435_v48 }
 0xb58   :  { %v3391_v39 = vpop.eup %3390 }
 0xb59   :  { %v3393_v54 = vpop.eup %3392  ;;  %v2101_v14 = vmax.f32 %v3391_v39, 0.0 }
 0xb5a   :  { %v2100_v19 = vmax.f32 %v3393_v54, 0.0 }
 0xb5b   :  { %v2103_v25 = vmin.f32 %v2101_v14, 1.0 }
 0xb5c   :  { %v2102_v32 = vmin.f32 %v2100_v19, 1.0 }
 0xb5d   :  { %v2111_v53 = vsub.f32 1.0, %v2103_v25  ;;  %v2105_v56 = vmax.f32 %v2103_v25, 0.001 }
 0xb5e   :  { %v2110_v26 = vsub.f32 1.0, %v2102_v32  ;;  %v2104_v17 = vmax.f32 %v2102_v32, 0.001 }
 0xb5f   :  { %v2113_v37 = vmax.f32 %v2111_v53, 0.001 }
 0xb60   :  { %v2112_v47 = vmax.f32 %v2110_v26, 0.001 }
 0xb61   :  { %3394 = vlog2.f32 %v2113_v37 }
 0xb62   :  { %3396 = vlog2.f32 %v2112_v47 }
 0xb63   :  { %3398 = vlog2.f32 %v2105_v56 }
 0xb64   :  { %3400 = vlog2.f32 %v2104_v17 }
 0xb6b   :  { %v3395_v31 = vpop.eup %3394 }
 0xb6c   :  { %v3397_v57 = vpop.eup %3396  ;;  %v2117_v11 = vmul.f32 0.6931472, %v3395_v31 }
 0xb6d   :  { %v3399_v8 = vpop.eup %3398  ;;  %v2115_v45 = vmul.f32 0.6931472, %v3397_v57 }
 0xb6e   :  { %v3401_v61 = vpop.eup %3400  ;;  %v2109_v24 = vmul.f32 0.6931472, %v3399_v8 }
 0xb6f   :  { %v2107_v44 = vmul.f32 0.6931472, %v3401_v61 }
 0xb70   :  { %v2119_v10 = vsub.f32 %v2109_v24, %v2117_v11 }
 0xb71   :  { %v2118_v7 = vsub.f32 %v2107_v44, %v2115_v45 }
 0xbdd   :  { %v3158_v41 = vpop.f32.mrb[30].mxu1 }
 0xbde   :  { %v2097_v27 = vadd.f32 %v3158_v41, %v2608_v52  ;;  %v2091_v1 = vpop.f32.mrb[31].mxu1 }
 0xbdf   :  { %v2092_v46 = vadd.f32 %v2608_v52, %v2091_v1 }
 0xbe0   :  { %v2121_v59 = vadd.f32 %v2119_v10, %v2097_v27 }
 0xbe1   :  { %v2120_v5 = vadd.f32 %v2118_v7, %v2092_v46 }
 0xbe2   :  { %v2636_v2 = vmul.f32 -1.442695, %v2121_v59 }
 0xbe3   :  { %v2635_v0 = vmul.f32 -1.442695, %v2120_v5 }
 0xbe4   :  { %3402 = vpow2.f32 %v2636_v2 }
 0xbe5   :  { %3404 = vpow2.f32 %v2635_v0 }
 0xbee   :  { %v3403_v15 = vpop.eup %3402 }
 0xbef   :  { %v3405_v16 = vpop.eup %3404  ;;  %v2129_v42 = vadd.f32 1.0, %v3403_v15 }
 0xbf0   :  { %v2128_v50 = vadd.f32 1.0, %v3405_v16 }
 0xbf1   :  { %3406 = vrcp.f32 %v2129_v42 }
 0xbf2   :  { %3408 = vrcp.f32 %v2128_v50 }
 0xbfb   :  { %v3407_v6 = vpop.eup %3406 }
 0xbfc   :  { %v3409_v9 = vpop.eup %3408  ;;  %2136 = vst.msk [vmem:[%s4434_s16 + $0x8] sm:$0xff] %vm2134_vm7, %v3407_v6 }
 0xbfd   :  { %2135 = vst.msk [vmem:[%s4434_s16] sm:$0xff] %vm2134_vm7, %v3409_v9 }
 0xc1d   :  { %v2466_v30 = vpop.f32.mrb[32].mxu1 }
 0xc1e   :  { %v2499_v33 = vsel %vm2495_vm9, %v2466_v30, -inf  ;;  %v2468_v34 = vpop.f32.mrb[33].mxu1 }
 0xc1f   :  { %2503 = vst [vmem:[#allocation2 + $0x10] sm:$0xff] %v2499_v33  ;;  %v2500_v49 = vsel %vm2496_vm10, %v2468_v34, -inf }
 0xc20   :  { %2504 = vst [vmem:[#allocation2 + $0x18] sm:$0xff] %v2500_v49 }
 0xc21   :  { %3421 = shalt.err (!%p3418_p4)
}
 0xc22   :  { %s3422_s10 = scalar_lea.hbm %s4433_s15, 512 }
 0xc23   :  { %p3423_p5 = scmp.ne.s32.totalorder %s4433_s15, %s3422_s10  ;;  %p3426_p6 = scmp.lt.u32.totalorder %s3422_s10, %s4433_s15 }
 0xc25   :  { %p3428_p7 = pnand %p3426_p6, %p3423_p5 }
 0xc27   :  { %3431 = shalt.err (!%p3428_p7)
}
 0xc28   :  { %s3439_s20 = smov 256   ;;  %s3440_s9 = smov 16  }
 0xc29   :  { %2516 = dma.vmem_to_hbm [thread:$0]  %s2511_s7, 512, %s4433_s15, [#allocation3], %s3439_s20, %s3439_s20, %s3440_s9  }
 0xc2a   :  { %3432 = dma.done.wait [#allocation3], 512  }
 0xc2b   :  { %3433 = vsyncadd [#allocation3], 4294966784 }
 0xc2c   :  { %2524 = vsyncpa [#allocation3], 1 }

</bundles_post_ra>
